<compile_context>
chip_gen: v7x
topology: tpu7x:2x2x1
jax: 0.10.0
libtpu: 0.0.40
codegen_flags: <defaults>
</compile_context>

<pallas_src>
import functools

import jax
import jax.numpy as jnp
from jax.experimental import pallas as pl
from jax.experimental.pallas import tpu as pltpu


def _rrr_gradcam_kernel(wc_ref, bc_ref, x_ref, wfc_ref, e_ref, out_ref,
                        *, hw_valid, approx_recip):
    """One grid step == one block of B samples (fully vectorized over B).

    wc_ref : SMEM (Cout, Cin)   1x1-conv weight (scalar table)
    bc_ref : SMEM (Cout,)       1x1-conv bias
    x_ref  : VMEM (Cin, B, HWp) inputs, channel-major -> x_ref[c] dense slab
    wfc_ref: VMEM (B, Cout)     fc_w[argmax(logits)] per sample
    e_ref  : VMEM (B, HWp)      (resized) penalty mask, zero at HW/batch pads
    out_ref: VMEM (1, 8, 128)   per-block partial sum (lane-dense store)
    """
    cin, b, hw_pad = x_ref.shape
    cout = wfc_ref.shape[-1]
    inv_hw2 = 1.0 / float(hw_valid * hw_valid)

    # Load the Cin dense (B, HWp) slabs once; reused by both passes.
    x = [x_ref[c] for c in range(cin)]
    wfc = wfc_ref[...]                                          # (B, Cout)

    has_lane_pad = hw_pad != hw_valid
    if has_lane_pad:
        lane = jax.lax.broadcasted_iota(jnp.int32, (b, hw_pad), 1)
        valid = lane < hw_valid                                 # (B, HWp) bool

    # -------- Pass 1: per-output-channel alpha only (no sal accumulator) ----
    # alpha_o[b] = Wfc[t_b, o] * (#pixels with acts_o > 0) / HW^2
    alpha = []
    for o in range(cout):
        acts = x[0] * wc_ref[o, 0]
        for c in range(1, cin):
            acts = acts + x[c] * wc_ref[o, c]
        acts = acts + bc_ref[o]                                 # (B, HWp)
        pos = (acts > 0.0).astype(jnp.float32)
        if has_lane_pad:
            pos = jnp.where(valid, pos, 0.0)   # pads have acts==bias -> mask out
        msum = jnp.sum(pos, axis=-1, keepdims=True)             # (B, 1)
        alpha.append(wfc[:, o:o + 1] * (msum * inv_hw2))        # (B, 1)

    # Collapse alphas:  sal = sum_o alpha_o*(sum_c wc[o,c]*x_c + bc[o])
    #                       = sum_c beta_c*x_c + gamma          (tiny (B,1) FMAs)
    beta = []
    for c in range(cin):
        acc = alpha[0] * wc_ref[0, c]
        for o in range(1, cout):
            acc = acc + alpha[o] * wc_ref[o, c]
        beta.append(acc)                                        # (B, 1)
    gamma = alpha[0] * bc_ref[0]
    for o in range(1, cout):
        gamma = gamma + alpha[o] * bc_ref[o]                    # (B, 1)

    # -------- Pass 2: single-sweep saliency ---------------------------------
    sal = x[0] * beta[0]
    for c in range(1, cin):
        sal = sal + x[c] * beta[c]
    sal = sal + gamma                                           # (B, HWp)

    # util.norm_saliencies_fast: per-sample min/max (pad lanes excluded).
    if has_lane_pad:
        smin = jnp.min(jnp.where(valid, sal, jnp.inf), axis=-1, keepdims=True)
        smax = jnp.max(jnp.where(valid, sal, -jnp.inf), axis=-1, keepdims=True)
    else:
        smin = jnp.min(sal, axis=-1, keepdims=True)
        smax = jnp.max(sal, axis=-1, keepdims=True)
    denom = (smax - smin) + 1e-6
    inv = pl.reciprocal(denom, approx=True) if approx_recip else 1.0 / denom

    # Fused loss: (e*sal_n)^2 = inv^2 * (e*(sal-smin))^2; E is zero at every
    # padded lane/sample so pads contribute exactly 0.
    t = e_ref[...] * (sal - smin)
    rowsum = jnp.sum(t * t, axis=-1, keepdims=True)             # (B, 1)
    partial = jnp.sum(rowsum * (inv * inv))
    out_ref[...] = jnp.broadcast_to(partial, out_ref.shape)     # lane-dense store


def rrr_gradcam_rr_loss(X, E_pnlt, logits, conv_w, conv_b, fc_w,
                        normalization_rate, regularization_rate,
                        rr_clipping=None, reduction='sum',
                        block_n=None, vmem_budget_bytes=24 * 1024 * 1024,
                        approx_recip=True, X_chan_major=None):
    """Right-reason loss of RRRGradCamLoss.forward (mask=None path)."""
    N, Cin, H, W = X.shape
    Cout = conv_w.shape[0]
    HW = H * W
    HW_pad = int(pl.cdiv(HW, 128) * 128)     # lane-dense; masked in-kernel

    # argmax(softmax(logits, dim=1), dim=1) == argmax(logits, dim=1)
    log_ys = jnp.argmax(logits, axis=1)
    wfc_sel = fc_w[log_ys].astype(jnp.float32)                  # (N, Cout)

    # transforms.Resize((h, w))(E_pnlt): identity when shapes already match.
    if E_pnlt.shape[2:] != (H, W):
        e_ds = jax.image.resize(E_pnlt.astype(jnp.float32), (N, 1, H, W),
                                method='bilinear', antialias=False)
    else:
        e_ds = E_pnlt.astype(jnp.float32)
    e2 = e_ds.reshape(N, HW)

    # Channel-major X so the kernel reads dense (B, HW) slabs per input channel.
    # Producers that already hold X as (Cin, N, HW) f32 can pass it via
    # X_chan_major to skip this extra HBM read+write (XLA normally fuses the
    # cast+reshape+transpose into one copy, but avoiding it entirely is free).
    if X_chan_major is not None:
        x_t = X_chan_major.astype(jnp.float32)
    else:
        x_t = jnp.transpose(X.reshape(N, Cin, HW).astype(jnp.float32), (1, 0, 2))

    # ---- block sizing from a VMEM byte budget (safe on v7x's 64 MiB VMEM) ----
    # per-sample footprint ~ double-buffered inputs (Cin X-slabs + E) plus ~6
    # slab-sized live temporaries inside the body.
    per_sample_bytes = (2 * (Cin + 1) + 6) * HW_pad * 4
    if block_n is None:
        block_n = (vmem_budget_bytes // per_sample_bytes) // 8 * 8
        block_n = int(max(8, min(512, block_n)))
    else:
        block_n = max(8, (block_n // 8) * 8)

    if N <= block_n:
        # Keep >= 2 grid steps when the batch is big enough so the "parallel"
        # block axis can engage the second TensorCore on v7x.
        if N >= 16:
            B = max(8, (((N + 1) // 2) + 7) // 8 * 8)
        else:
            B = N
    else:
        B = block_n
    num_blocks = int(pl.cdiv(N, B))
    n_pad = num_blocks * B

    # Zero-pad batch tail and HW tail: padded samples (wfc=0 -> alpha=0 ->
    # sal=0) and padded lanes (E=0, masked in-kernel) contribute exactly 0.
    pad_n, pad_hw = n_pad - N, HW_pad - HW
    if pad_n or pad_hw:
        x_t = jnp.pad(x_t, ((0, 0), (0, pad_n), (0, pad_hw)))
        e2 = jnp.pad(e2, ((0, pad_n), (0, pad_hw)))
        if pad_n:
            wfc_sel = jnp.pad(wfc_sel, ((0, pad_n), (0, 0)))

    wc = conv_w.reshape(Cout, Cin).astype(jnp.float32)
    bc = conv_b.reshape(Cout).astype(jnp.float32)

    kernel = functools.partial(_rrr_gradcam_kernel,
                               hw_valid=HW, approx_recip=approx_recip)
    vmem_limit = max(32 * 1024 * 1024, int(1.25 * vmem_budget_bytes))

    out = pl.pallas_call(
        kernel,
        out_shape=jax.ShapeDtypeStruct((num_blocks, 8, 128), jnp.float32),
        grid=(num_blocks,),
        in_specs=[
            pl.BlockSpec(memory_space=pltpu.MemorySpace.SMEM),    # conv weight
            pl.BlockSpec(memory_space=pltpu.MemorySpace.SMEM),    # conv bias
            pl.BlockSpec((Cin, B, HW_pad), lambda i: (0, i, 0)),  # X (chan-major)
            pl.BlockSpec((B, Cout), lambda i: (i, 0)),            # Wfc[target]
            pl.BlockSpec((B, HW_pad), lambda i: (i, 0)),          # resized E_pnlt
        ],
        out_specs=pl.BlockSpec((1, 8, 128), lambda i: (i, 0, 0)),
        compiler_params=pltpu.CompilerParams(
            dimension_semantics=("parallel",),        # blocks are independent
            vmem_limit_bytes=vmem_limit),
    )(wc, bc, x_t, wfc_sel, e2)

    rr = jnp.sum(out[:, 0, 0])
    if reduction == 'mean':
        rr = rr / N
    rr = rr * normalization_rate
    rr = rr * regularization_rate
    if rr_clipping is not None:
        rr = jnp.where(rr > rr_clipping, jnp.float32(rr_clipping), rr)
    # TODO(synk): optional per-sample `mask` argument not implemented (mask=None path).
    return rr


# ---------------- synthetic model + pure-JAX reference (for checking) ----------------

def model_forward(X, conv_w, conv_b, fc_w, fc_b):
    N, Cin, H, W = X.shape
    Cout = conv_w.shape[0]
    acts = jnp.einsum('oc,nchw->nohw', conv_w.reshape(Cout, Cin), X) \
        + conv_b.reshape(1, Cout, 1, 1)
    pooled = jnp.mean(jax.nn.relu(acts), axis=(2, 3))
    return pooled @ fc_w.T + fc_b


def rr_loss_ref(X, E_pnlt, logits, conv_w, conv_b, fc_w,
                norm_rate, reg_rate, rr_clipping=None, reduction='sum'):
    N, Cin, H, W = X.shape
    Cout = conv_w.shape[0]
    t = jnp.argmax(jax.nn.softmax(logits, axis=1), axis=1)
    acts = jnp.einsum('oc,nchw->nohw', conv_w.reshape(Cout, Cin), X) \
        + conv_b.reshape(1, Cout, 1, 1)
    hw = H * W
    grads = fc_w[t][:, :, None, None] * (acts > 0).astype(jnp.float32) / hw
    alpha = jnp.mean(grads, axis=(2, 3), keepdims=True)
    sal = jnp.sum(alpha * acts, axis=1, keepdims=True)            # (N,1,H,W)
    flat = sal.reshape(N, -1)
    flat = flat - jnp.min(flat, axis=1, keepdims=True)
    flat = flat / (jnp.max(flat, axis=1, keepdims=True) + 1e-6)
    sal_n = flat.reshape(N, 1, H, W)
    e_ds = jax.image.resize(E_pnlt.astype(jnp.float32), (N, 1, H, W),
                            method='bilinear', antialias=False)
    attr = (e_ds * sal_n) ** 2
    rr = jnp.sum(attr)
    if reduction == 'mean':
        rr = rr / N
    rr = rr * norm_rate * reg_rate
    if rr_clipping is not None:
        rr = jnp.where(rr > rr_clipping, jnp.float32(rr_clipping), rr)
    return rr


if __name__ == "__main__":
    key = jax.random.PRNGKey(0)
    N, Cin, H, W = 2, 4, 16, 16
    Cout, num_classes = 8, 3
    k1, k2, k3, k4, k5, k6 = jax.random.split(key, 6)

    X = jax.random.normal(k1, (N, Cin, H, W), jnp.float32)
    E_pnlt = (jax.random.uniform(k2, (N, 1, H, W)) > 0.5).astype(jnp.float32)
    conv_w = jax.random.normal(k3, (Cout, Cin, 1, 1), jnp.float32) * 0.3
    conv_b = jax.random.normal(k4, (Cout,), jnp.float32) * 0.1
    fc_w = jax.random.normal(k5, (num_classes, Cout), jnp.float32) * 0.3
    fc_b = jax.random.normal(k6, (num_classes,), jnp.float32) * 0.1

    logits = model_forward(X, conv_w, conv_b, fc_w, fc_b)

    normalization_rate, regularization_rate, rr_clipping = 1.0, 10.0, None
    loss = rrr_gradcam_rr_loss(X, E_pnlt, logits, conv_w, conv_b, fc_w,
                               normalization_rate, regularization_rate,
                               rr_clipping=rr_clipping, reduction='sum')
    loss = jax.block_until_ready(loss)

    ref = rr_loss_ref(X, E_pnlt, logits, conv_w, conv_b, fc_w,
                      normalization_rate, regularization_rate,
                      rr_clipping=rr_clipping, reduction='sum')
    ref = jax.block_until_ready(ref)

    # Tolerance accounts for the approximate (EUP) reciprocal in the kernel.
    err = abs(float(loss) - float(ref))
    assert err < 5e-3 * max(1.0, abs(float(ref))), \
        f"mismatch: pallas={float(loss)} ref={float(ref)}"
    print("KERNEL_OK")
</pallas_src>

<mosaic_0001>
module attributes {stable_mosaic.version = 11 : i64} {
  func.func @_rrr_gradcam_kernel(%arg0: i32, %arg1: memref<8x4xf32, #tpu.memory_space<smem>>, %arg2: memref<8xf32, #tpu.memory_space<smem>>, %arg3: memref<4x2x256xf32, #tpu.memory_space<vmem>>, %arg4: memref<2x8xf32, #tpu.memory_space<vmem>>, %arg5: memref<2x256xf32, #tpu.memory_space<vmem>>, %arg6: memref<1x8x128xf32, #tpu.memory_space<vmem>>) attributes {dimension_semantics = [#tpu.dimension_semantics<parallel>], iteration_bounds = array<i64: 1>, scalar_prefetch = 0 : i64, scratch_operands = 0 : i64, tpu.core_type = #tpu.core_type<tc>, window_params = [{transform_indices = @transform_0, window_bounds = array<i64: 8, 4>}, {transform_indices = @transform_1, window_bounds = array<i64: 8>}, {transform_indices = @transform_2, window_bounds = array<i64: 4, 2, 256>}, {transform_indices = @transform_3, window_bounds = array<i64: 2, 8>}, {transform_indices = @transform_4, window_bounds = array<i64: 2, 256>}, {transform_indices = @transform_5, window_bounds = array<i64: 1, 8, 128>}]} {
    %c0 = arith.constant 0 : index
    %c0_0 = arith.constant 0 : index
    %c0_1 = arith.constant 0 : index
    %0 = vector.load %arg3[%c0, %c0_0, %c0_1] : memref<4x2x256xf32, #tpu.memory_space<vmem>>, vector<1x2x256xf32>
    %1 = vector.shape_cast %0 : vector<1x2x256xf32> to vector<2x256xf32>
    %c1 = arith.constant 1 : index
    %c0_2 = arith.constant 0 : index
    %c0_3 = arith.constant 0 : index
    %2 = vector.load %arg3[%c1, %c0_2, %c0_3] : memref<4x2x256xf32, #tpu.memory_space<vmem>>, vector<1x2x256xf32>
    %3 = vector.shape_cast %2 : vector<1x2x256xf32> to vector<2x256xf32>
    %c2 = arith.constant 2 : index
    %c0_4 = arith.constant 0 : index
    %c0_5 = arith.constant 0 : index
    %4 = vector.load %arg3[%c2, %c0_4, %c0_5] : memref<4x2x256xf32, #tpu.memory_space<vmem>>, vector<1x2x256xf32>
    %5 = vector.shape_cast %4 : vector<1x2x256xf32> to vector<2x256xf32>
    %c3 = arith.constant 3 : index
    %c0_6 = arith.constant 0 : index
    %c0_7 = arith.constant 0 : index
    %6 = vector.load %arg3[%c3, %c0_6, %c0_7] : memref<4x2x256xf32, #tpu.memory_space<vmem>>, vector<1x2x256xf32>
    %7 = vector.shape_cast %6 : vector<1x2x256xf32> to vector<2x256xf32>
    %c0_8 = arith.constant 0 : index
    %c0_9 = arith.constant 0 : index
    %8 = vector.load %arg4[%c0_8, %c0_9] : memref<2x8xf32, #tpu.memory_space<vmem>>, vector<2x8xf32>
    %c0_10 = arith.constant 0 : index
    %c0_11 = arith.constant 0 : index
    %9 = memref.load %arg1[%c0_10, %c0_11] : memref<8x4xf32, #tpu.memory_space<smem>>
    %10 = vector.broadcast %9 : f32 to vector<2x256xf32>
    %11 = arith.mulf %1, %10 : vector<2x256xf32>
    %c0_12 = arith.constant 0 : index
    %c1_13 = arith.constant 1 : index
    %12 = memref.load %arg1[%c0_12, %c1_13] : memref<8x4xf32, #tpu.memory_space<smem>>
    %13 = vector.broadcast %12 : f32 to vector<2x256xf32>
    %14 = arith.mulf %3, %13 : vector<2x256xf32>
    %15 = arith.addf %11, %14 : vector<2x256xf32>
    %c0_14 = arith.constant 0 : index
    %c2_15 = arith.constant 2 : index
    %16 = memref.load %arg1[%c0_14, %c2_15] : memref<8x4xf32, #tpu.memory_space<smem>>
    %17 = vector.broadcast %16 : f32 to vector<2x256xf32>
    %18 = arith.mulf %5, %17 : vector<2x256xf32>
    %19 = arith.addf %15, %18 : vector<2x256xf32>
    %c0_16 = arith.constant 0 : index
    %c3_17 = arith.constant 3 : index
    %20 = memref.load %arg1[%c0_16, %c3_17] : memref<8x4xf32, #tpu.memory_space<smem>>
    %21 = vector.broadcast %20 : f32 to vector<2x256xf32>
    %22 = arith.mulf %7, %21 : vector<2x256xf32>
    %23 = arith.addf %19, %22 : vector<2x256xf32>
    %c0_18 = arith.constant 0 : index
    %24 = memref.load %arg2[%c0_18] : memref<8xf32, #tpu.memory_space<smem>>
    %25 = vector.broadcast %24 : f32 to vector<2x256xf32>
    %26 = arith.addf %23, %25 : vector<2x256xf32>
    %cst = arith.constant 0.000000e+00 : f32
    %27 = vector.broadcast %cst : f32 to vector<2x256xf32>
    %28 = arith.cmpf ogt, %26, %27 : vector<2x256xf32>
    %29 = arith.extui %28 : vector<2x256xi1> to vector<2x256xi32>
    %30 = arith.sitofp %29 : vector<2x256xi32> to vector<2x256xf32>
    %cst_19 = arith.constant dense<0.000000e+00> : vector<2xf32>
    %31 = vector.multi_reduction <add>, %30, %cst_19 [1] : vector<2x256xf32> to vector<2xf32>
    %32 = vector.shape_cast %31 : vector<2xf32> to vector<2x1xf32>
    %33 = vector.extract_strided_slice %8 {offsets = [0, 0], sizes = [2, 1], strides = [1, 1]} : vector<2x8xf32> to vector<2x1xf32>
    %cst_20 = arith.constant 1.52587891E-5 : f32
    %34 = vector.broadcast %cst_20 : f32 to vector<2x1xf32>
    %35 = arith.mulf %32, %34 : vector<2x1xf32>
    %36 = arith.mulf %33, %35 : vector<2x1xf32>
    %c1_21 = arith.constant 1 : index
    %c0_22 = arith.constant 0 : index
    %37 = memref.load %arg1[%c1_21, %c0_22] : memref<8x4xf32, #tpu.memory_space<smem>>
    %38 = vector.broadcast %37 : f32 to vector<2x256xf32>
    %39 = arith.mulf %1, %38 : vector<2x256xf32>
    %c1_23 = arith.constant 1 : index
    %c1_24 = arith.constant 1 : index
    %40 = memref.load %arg1[%c1_23, %c1_24] : memref<8x4xf32, #tpu.memory_space<smem>>
    %41 = vector.broadcast %40 : f32 to vector<2x256xf32>
    %42 = arith.mulf %3, %41 : vector<2x256xf32>
    %43 = arith.addf %39, %42 : vector<2x256xf32>
    %c1_25 = arith.constant 1 : index
    %c2_26 = arith.constant 2 : index
    %44 = memref.load %arg1[%c1_25, %c2_26] : memref<8x4xf32, #tpu.memory_space<smem>>
    %45 = vector.broadcast %44 : f32 to vector<2x256xf32>
    %46 = arith.mulf %5, %45 : vector<2x256xf32>
    %47 = arith.addf %43, %46 : vector<2x256xf32>
    %c1_27 = arith.constant 1 : index
    %c3_28 = arith.constant 3 : index
    %48 = memref.load %arg1[%c1_27, %c3_28] : memref<8x4xf32, #tpu.memory_space<smem>>
    %49 = vector.broadcast %48 : f32 to vector<2x256xf32>
    %50 = arith.mulf %7, %49 : vector<2x256xf32>
    %51 = arith.addf %47, %50 : vector<2x256xf32>
    %c1_29 = arith.constant 1 : index
    %52 = memref.load %arg2[%c1_29] : memref<8xf32, #tpu.memory_space<smem>>
    %53 = vector.broadcast %52 : f32 to vector<2x256xf32>
    %54 = arith.addf %51, %53 : vector<2x256xf32>
    %cst_30 = arith.constant 0.000000e+00 : f32
    %55 = vector.broadcast %cst_30 : f32 to vector<2x256xf32>
    %56 = arith.cmpf ogt, %54, %55 : vector<2x256xf32>
    %57 = arith.extui %56 : vector<2x256xi1> to vector<2x256xi32>
    %58 = arith.sitofp %57 : vector<2x256xi32> to vector<2x256xf32>
    %cst_31 = arith.constant dense<0.000000e+00> : vector<2xf32>
    %59 = vector.multi_reduction <add>, %58, %cst_31 [1] : vector<2x256xf32> to vector<2xf32>
    %60 = vector.shape_cast %59 : vector<2xf32> to vector<2x1xf32>
    %61 = vector.extract_strided_slice %8 {offsets = [0, 1], sizes = [2, 1], strides = [1, 1]} : vector<2x8xf32> to vector<2x1xf32>
    %cst_32 = arith.constant 1.52587891E-5 : f32
    %62 = vector.broadcast %cst_32 : f32 to vector<2x1xf32>
    %63 = arith.mulf %60, %62 : vector<2x1xf32>
    %64 = arith.mulf %61, %63 : vector<2x1xf32>
    %c2_33 = arith.constant 2 : index
    %c0_34 = arith.constant 0 : index
    %65 = memref.load %arg1[%c2_33, %c0_34] : memref<8x4xf32, #tpu.memory_space<smem>>
    %66 = vector.broadcast %65 : f32 to vector<2x256xf32>
    %67 = arith.mulf %1, %66 : vector<2x256xf32>
    %c2_35 = arith.constant 2 : index
    %c1_36 = arith.constant 1 : index
    %68 = memref.load %arg1[%c2_35, %c1_36] : memref<8x4xf32, #tpu.memory_space<smem>>
    %69 = vector.broadcast %68 : f32 to vector<2x256xf32>
    %70 = arith.mulf %3, %69 : vector<2x256xf32>
    %71 = arith.addf %67, %70 : vector<2x256xf32>
    %c2_37 = arith.constant 2 : index
    %c2_38 = arith.constant 2 : index
    %72 = memref.load %arg1[%c2_37, %c2_38] : memref<8x4xf32, #tpu.memory_space<smem>>
    %73 = vector.broadcast %72 : f32 to vector<2x256xf32>
    %74 = arith.mulf %5, %73 : vector<2x256xf32>
    %75 = arith.addf %71, %74 : vector<2x256xf32>
    %c2_39 = arith.constant 2 : index
    %c3_40 = arith.constant 3 : index
    %76 = memref.load %arg1[%c2_39, %c3_40] : memref<8x4xf32, #tpu.memory_space<smem>>
    %77 = vector.broadcast %76 : f32 to vector<2x256xf32>
    %78 = arith.mulf %7, %77 : vector<2x256xf32>
    %79 = arith.addf %75, %78 : vector<2x256xf32>
    %c2_41 = arith.constant 2 : index
    %80 = memref.load %arg2[%c2_41] : memref<8xf32, #tpu.memory_space<smem>>
    %81 = vector.broadcast %80 : f32 to vector<2x256xf32>
    %82 = arith.addf %79, %81 : vector<2x256xf32>
    %cst_42 = arith.constant 0.000000e+00 : f32
    %83 = vector.broadcast %cst_42 : f32 to vector<2x256xf32>
    %84 = arith.cmpf ogt, %82, %83 : vector<2x256xf32>
    %85 = arith.extui %84 : vector<2x256xi1> to vector<2x256xi32>
    %86 = arith.sitofp %85 : vector<2x256xi32> to vector<2x256xf32>
    %cst_43 = arith.constant dense<0.000000e+00> : vector<2xf32>
    %87 = vector.multi_reduction <add>, %86, %cst_43 [1] : vector<2x256xf32> to vector<2xf32>
    %88 = vector.shape_cast %87 : vector<2xf32> to vector<2x1xf32>
    %89 = vector.extract_strided_slice %8 {offsets = [0, 2], sizes = [2, 1], strides = [1, 1]} : vector<2x8xf32> to vector<2x1xf32>
    %cst_44 = arith.constant 1.52587891E-5 : f32
    %90 = vector.broadcast %cst_44 : f32 to vector<2x1xf32>
    %91 = arith.mulf %88, %90 : vector<2x1xf32>
    %92 = arith.mulf %89, %91 : vector<2x1xf32>
    %c3_45 = arith.constant 3 : index
    %c0_46 = arith.constant 0 : index
    %93 = memref.load %arg1[%c3_45, %c0_46] : memref<8x4xf32, #tpu.memory_space<smem>>
    %94 = vector.broadcast %93 : f32 to vector<2x256xf32>
    %95 = arith.mulf %1, %94 : vector<2x256xf32>
    %c3_47 = arith.constant 3 : index
    %c1_48 = arith.constant 1 : index
    %96 = memref.load %arg1[%c3_47, %c1_48] : memref<8x4xf32, #tpu.memory_space<smem>>
    %97 = vector.broadcast %96 : f32 to vector<2x256xf32>
    %98 = arith.mulf %3, %97 : vector<2x256xf32>
    %99 = arith.addf %95, %98 : vector<2x256xf32>
    %c3_49 = arith.constant 3 : index
    %c2_50 = arith.constant 2 : index
    %100 = memref.load %arg1[%c3_49, %c2_50] : memref<8x4xf32, #tpu.memory_space<smem>>
    %101 = vector.broadcast %100 : f32 to vector<2x256xf32>
    %102 = arith.mulf %5, %101 : vector<2x256xf32>
    %103 = arith.addf %99, %102 : vector<2x256xf32>
    %c3_51 = arith.constant 3 : index
    %c3_52 = arith.constant 3 : index
    %104 = memref.load %arg1[%c3_51, %c3_52] : memref<8x4xf32, #tpu.memory_space<smem>>
    %105 = vector.broadcast %104 : f32 to vector<2x256xf32>
    %106 = arith.mulf %7, %105 : vector<2x256xf32>
    %107 = arith.addf %103, %106 : vector<2x256xf32>
    %c3_53 = arith.constant 3 : index
    %108 = memref.load %arg2[%c3_53] : memref<8xf32, #tpu.memory_space<smem>>
    %109 = vector.broadcast %108 : f32 to vector<2x256xf32>
    %110 = arith.addf %107, %109 : vector<2x256xf32>
    %cst_54 = arith.constant 0.000000e+00 : f32
    %111 = vector.broadcast %cst_54 : f32 to vector<2x256xf32>
    %112 = arith.cmpf ogt, %110, %111 : vector<2x256xf32>
    %113 = arith.extui %112 : vector<2x256xi1> to vector<2x256xi32>
    %114 = arith.sitofp %113 : vector<2x256xi32> to vector<2x256xf32>
    %cst_55 = arith.constant dense<0.000000e+00> : vector<2xf32>
    %115 = vector.multi_reduction <add>, %114, %cst_55 [1] : vector<2x256xf32> to vector<2xf32>
    %116 = vector.shape_cast %115 : vector<2xf32> to vector<2x1xf32>
    %117 = vector.extract_strided_slice %8 {offsets = [0, 3], sizes = [2, 1], strides = [1, 1]} : vector<2x8xf32> to vector<2x1xf32>
    %cst_56 = arith.constant 1.52587891E-5 : f32
    %118 = vector.broadcast %cst_56 : f32 to vector<2x1xf32>
    %119 = arith.mulf %116, %118 : vector<2x1xf32>
    %120 = arith.mulf %117, %119 : vector<2x1xf32>
    %c4 = arith.constant 4 : index
    %c0_57 = arith.constant 0 : index
    %121 = memref.load %arg1[%c4, %c0_57] : memref<8x4xf32, #tpu.memory_space<smem>>
    %122 = vector.broadcast %121 : f32 to vector<2x256xf32>
    %123 = arith.mulf %1, %122 : vector<2x256xf32>
    %c4_58 = arith.constant 4 : index
    %c1_59 = arith.constant 1 : index
    %124 = memref.load %arg1[%c4_58, %c1_59] : memref<8x4xf32, #tpu.memory_space<smem>>
    %125 = vector.broadcast %124 : f32 to vector<2x256xf32>
    %126 = arith.mulf %3, %125 : vector<2x256xf32>
    %127 = arith.addf %123, %126 : vector<2x256xf32>
    %c4_60 = arith.constant 4 : index
    %c2_61 = arith.constant 2 : index
    %128 = memref.load %arg1[%c4_60, %c2_61] : memref<8x4xf32, #tpu.memory_space<smem>>
    %129 = vector.broadcast %128 : f32 to vector<2x256xf32>
    %130 = arith.mulf %5, %129 : vector<2x256xf32>
    %131 = arith.addf %127, %130 : vector<2x256xf32>
    %c4_62 = arith.constant 4 : index
    %c3_63 = arith.constant 3 : index
    %132 = memref.load %arg1[%c4_62, %c3_63] : memref<8x4xf32, #tpu.memory_space<smem>>
    %133 = vector.broadcast %132 : f32 to vector<2x256xf32>
    %134 = arith.mulf %7, %133 : vector<2x256xf32>
    %135 = arith.addf %131, %134 : vector<2x256xf32>
    %c4_64 = arith.constant 4 : index
    %136 = memref.load %arg2[%c4_64] : memref<8xf32, #tpu.memory_space<smem>>
    %137 = vector.broadcast %136 : f32 to vector<2x256xf32>
    %138 = arith.addf %135, %137 : vector<2x256xf32>
    %cst_65 = arith.constant 0.000000e+00 : f32
    %139 = vector.broadcast %cst_65 : f32 to vector<2x256xf32>
    %140 = arith.cmpf ogt, %138, %139 : vector<2x256xf32>
    %141 = arith.extui %140 : vector<2x256xi1> to vector<2x256xi32>
    %142 = arith.sitofp %141 : vector<2x256xi32> to vector<2x256xf32>
    %cst_66 = arith.constant dense<0.000000e+00> : vector<2xf32>
    %143 = vector.multi_reduction <add>, %142, %cst_66 [1] : vector<2x256xf32> to vector<2xf32>
    %144 = vector.shape_cast %143 : vector<2xf32> to vector<2x1xf32>
    %145 = vector.extract_strided_slice %8 {offsets = [0, 4], sizes = [2, 1], strides = [1, 1]} : vector<2x8xf32> to vector<2x1xf32>
    %cst_67 = arith.constant 1.52587891E-5 : f32
    %146 = vector.broadcast %cst_67 : f32 to vector<2x1xf32>
    %147 = arith.mulf %144, %146 : vector<2x1xf32>
    %148 = arith.mulf %145, %147 : vector<2x1xf32>
    %c5 = arith.constant 5 : index
    %c0_68 = arith.constant 0 : index
    %149 = memref.load %arg1[%c5, %c0_68] : memref<8x4xf32, #tpu.memory_space<smem>>
    %150 = vector.broadcast %149 : f32 to vector<2x256xf32>
    %151 = arith.mulf %1, %150 : vector<2x256xf32>
    %c5_69 = arith.constant 5 : index
    %c1_70 = arith.constant 1 : index
    %152 = memref.load %arg1[%c5_69, %c1_70] : memref<8x4xf32, #tpu.memory_space<smem>>
    %153 = vector.broadcast %152 : f32 to vector<2x256xf32>
    %154 = arith.mulf %3, %153 : vector<2x256xf32>
    %155 = arith.addf %151, %154 : vector<2x256xf32>
    %c5_71 = arith.constant 5 : index
    %c2_72 = arith.constant 2 : index
    %156 = memref.load %arg1[%c5_71, %c2_72] : memref<8x4xf32, #tpu.memory_space<smem>>
    %157 = vector.broadcast %156 : f32 to vector<2x256xf32>
    %158 = arith.mulf %5, %157 : vector<2x256xf32>
    %159 = arith.addf %155, %158 : vector<2x256xf32>
    %c5_73 = arith.constant 5 : index
    %c3_74 = arith.constant 3 : index
    %160 = memref.load %arg1[%c5_73, %c3_74] : memref<8x4xf32, #tpu.memory_space<smem>>
    %161 = vector.broadcast %160 : f32 to vector<2x256xf32>
    %162 = arith.mulf %7, %161 : vector<2x256xf32>
    %163 = arith.addf %159, %162 : vector<2x256xf32>
    %c5_75 = arith.constant 5 : index
    %164 = memref.load %arg2[%c5_75] : memref<8xf32, #tpu.memory_space<smem>>
    %165 = vector.broadcast %164 : f32 to vector<2x256xf32>
    %166 = arith.addf %163, %165 : vector<2x256xf32>
    %cst_76 = arith.constant 0.000000e+00 : f32
    %167 = vector.broadcast %cst_76 : f32 to vector<2x256xf32>
    %168 = arith.cmpf ogt, %166, %167 : vector<2x256xf32>
    %169 = arith.extui %168 : vector<2x256xi1> to vector<2x256xi32>
    %170 = arith.sitofp %169 : vector<2x256xi32> to vector<2x256xf32>
    %cst_77 = arith.constant dense<0.000000e+00> : vector<2xf32>
    %171 = vector.multi_reduction <add>, %170, %cst_77 [1] : vector<2x256xf32> to vector<2xf32>
    %172 = vector.shape_cast %171 : vector<2xf32> to vector<2x1xf32>
    %173 = vector.extract_strided_slice %8 {offsets = [0, 5], sizes = [2, 1], strides = [1, 1]} : vector<2x8xf32> to vector<2x1xf32>
    %cst_78 = arith.constant 1.52587891E-5 : f32
    %174 = vector.broadcast %cst_78 : f32 to vector<2x1xf32>
    %175 = arith.mulf %172, %174 : vector<2x1xf32>
    %176 = arith.mulf %173, %175 : vector<2x1xf32>
    %c6 = arith.constant 6 : index
    %c0_79 = arith.constant 0 : index
    %177 = memref.load %arg1[%c6, %c0_79] : memref<8x4xf32, #tpu.memory_space<smem>>
    %178 = vector.broadcast %177 : f32 to vector<2x256xf32>
    %179 = arith.mulf %1, %178 : vector<2x256xf32>
    %c6_80 = arith.constant 6 : index
    %c1_81 = arith.constant 1 : index
    %180 = memref.load %arg1[%c6_80, %c1_81] : memref<8x4xf32, #tpu.memory_space<smem>>
    %181 = vector.broadcast %180 : f32 to vector<2x256xf32>
    %182 = arith.mulf %3, %181 : vector<2x256xf32>
    %183 = arith.addf %179, %182 : vector<2x256xf32>
    %c6_82 = arith.constant 6 : index
    %c2_83 = arith.constant 2 : index
    %184 = memref.load %arg1[%c6_82, %c2_83] : memref<8x4xf32, #tpu.memory_space<smem>>
    %185 = vector.broadcast %184 : f32 to vector<2x256xf32>
    %186 = arith.mulf %5, %185 : vector<2x256xf32>
    %187 = arith.addf %183, %186 : vector<2x256xf32>
    %c6_84 = arith.constant 6 : index
    %c3_85 = arith.constant 3 : index
    %188 = memref.load %arg1[%c6_84, %c3_85] : memref<8x4xf32, #tpu.memory_space<smem>>
    %189 = vector.broadcast %188 : f32 to vector<2x256xf32>
    %190 = arith.mulf %7, %189 : vector<2x256xf32>
    %191 = arith.addf %187, %190 : vector<2x256xf32>
    %c6_86 = arith.constant 6 : index
    %192 = memref.load %arg2[%c6_86] : memref<8xf32, #tpu.memory_space<smem>>
    %193 = vector.broadcast %192 : f32 to vector<2x256xf32>
    %194 = arith.addf %191, %193 : vector<2x256xf32>
    %cst_87 = arith.constant 0.000000e+00 : f32
    %195 = vector.broadcast %cst_87 : f32 to vector<2x256xf32>
    %196 = arith.cmpf ogt, %194, %195 : vector<2x256xf32>
    %197 = arith.extui %196 : vector<2x256xi1> to vector<2x256xi32>
    %198 = arith.sitofp %197 : vector<2x256xi32> to vector<2x256xf32>
    %cst_88 = arith.constant dense<0.000000e+00> : vector<2xf32>
    %199 = vector.multi_reduction <add>, %198, %cst_88 [1] : vector<2x256xf32> to vector<2xf32>
    %200 = vector.shape_cast %199 : vector<2xf32> to vector<2x1xf32>
    %201 = vector.extract_strided_slice %8 {offsets = [0, 6], sizes = [2, 1], strides = [1, 1]} : vector<2x8xf32> to vector<2x1xf32>
    %cst_89 = arith.constant 1.52587891E-5 : f32
    %202 = vector.broadcast %cst_89 : f32 to vector<2x1xf32>
    %203 = arith.mulf %200, %202 : vector<2x1xf32>
    %204 = arith.mulf %201, %203 : vector<2x1xf32>
    %c7 = arith.constant 7 : index
    %c0_90 = arith.constant 0 : index
    %205 = memref.load %arg1[%c7, %c0_90] : memref<8x4xf32, #tpu.memory_space<smem>>
    %206 = vector.broadcast %205 : f32 to vector<2x256xf32>
    %207 = arith.mulf %1, %206 : vector<2x256xf32>
    %c7_91 = arith.constant 7 : index
    %c1_92 = arith.constant 1 : index
    %208 = memref.load %arg1[%c7_91, %c1_92] : memref<8x4xf32, #tpu.memory_space<smem>>
    %209 = vector.broadcast %208 : f32 to vector<2x256xf32>
    %210 = arith.mulf %3, %209 : vector<2x256xf32>
    %211 = arith.addf %207, %210 : vector<2x256xf32>
    %c7_93 = arith.constant 7 : index
    %c2_94 = arith.constant 2 : index
    %212 = memref.load %arg1[%c7_93, %c2_94] : memref<8x4xf32, #tpu.memory_space<smem>>
    %213 = vector.broadcast %212 : f32 to vector<2x256xf32>
    %214 = arith.mulf %5, %213 : vector<2x256xf32>
    %215 = arith.addf %211, %214 : vector<2x256xf32>
    %c7_95 = arith.constant 7 : index
    %c3_96 = arith.constant 3 : index
    %216 = memref.load %arg1[%c7_95, %c3_96] : memref<8x4xf32, #tpu.memory_space<smem>>
    %217 = vector.broadcast %216 : f32 to vector<2x256xf32>
    %218 = arith.mulf %7, %217 : vector<2x256xf32>
    %219 = arith.addf %215, %218 : vector<2x256xf32>
    %c7_97 = arith.constant 7 : index
    %220 = memref.load %arg2[%c7_97] : memref<8xf32, #tpu.memory_space<smem>>
    %221 = vector.broadcast %220 : f32 to vector<2x256xf32>
    %222 = arith.addf %219, %221 : vector<2x256xf32>
    %cst_98 = arith.constant 0.000000e+00 : f32
    %223 = vector.broadcast %cst_98 : f32 to vector<2x256xf32>
    %224 = arith.cmpf ogt, %222, %223 : vector<2x256xf32>
    %225 = arith.extui %224 : vector<2x256xi1> to vector<2x256xi32>
    %226 = arith.sitofp %225 : vector<2x256xi32> to vector<2x256xf32>
    %cst_99 = arith.constant dense<0.000000e+00> : vector<2xf32>
    %227 = vector.multi_reduction <add>, %226, %cst_99 [1] : vector<2x256xf32> to vector<2xf32>
    %228 = vector.shape_cast %227 : vector<2xf32> to vector<2x1xf32>
    %229 = vector.extract_strided_slice %8 {offsets = [0, 7], sizes = [2, 1], strides = [1, 1]} : vector<2x8xf32> to vector<2x1xf32>
    %cst_100 = arith.constant 1.52587891E-5 : f32
    %230 = vector.broadcast %cst_100 : f32 to vector<2x1xf32>
    %231 = arith.mulf %228, %230 : vector<2x1xf32>
    %232 = arith.mulf %229, %231 : vector<2x1xf32>
    %c0_101 = arith.constant 0 : index
    %c0_102 = arith.constant 0 : index
    %233 = memref.load %arg1[%c0_101, %c0_102] : memref<8x4xf32, #tpu.memory_space<smem>>
    %234 = vector.broadcast %233 : f32 to vector<2x1xf32>
    %235 = arith.mulf %36, %234 : vector<2x1xf32>
    %c1_103 = arith.constant 1 : index
    %c0_104 = arith.constant 0 : index
    %236 = memref.load %arg1[%c1_103, %c0_104] : memref<8x4xf32, #tpu.memory_space<smem>>
    %237 = vector.broadcast %236 : f32 to vector<2x1xf32>
    %238 = arith.mulf %64, %237 : vector<2x1xf32>
    %239 = arith.addf %235, %238 : vector<2x1xf32>
    %c2_105 = arith.constant 2 : index
    %c0_106 = arith.constant 0 : index
    %240 = memref.load %arg1[%c2_105, %c0_106] : memref<8x4xf32, #tpu.memory_space<smem>>
    %241 = vector.broadcast %240 : f32 to vector<2x1xf32>
    %242 = arith.mulf %92, %241 : vector<2x1xf32>
    %243 = arith.addf %239, %242 : vector<2x1xf32>
    %c3_107 = arith.constant 3 : index
    %c0_108 = arith.constant 0 : index
    %244 = memref.load %arg1[%c3_107, %c0_108] : memref<8x4xf32, #tpu.memory_space<smem>>
    %245 = vector.broadcast %244 : f32 to vector<2x1xf32>
    %246 = arith.mulf %120, %245 : vector<2x1xf32>
    %247 = arith.addf %243, %246 : vector<2x1xf32>
    %c4_109 = arith.constant 4 : index
    %c0_110 = arith.constant 0 : index
    %248 = memref.load %arg1[%c4_109, %c0_110] : memref<8x4xf32, #tpu.memory_space<smem>>
    %249 = vector.broadcast %248 : f32 to vector<2x1xf32>
    %250 = arith.mulf %148, %249 : vector<2x1xf32>
    %251 = arith.addf %247, %250 : vector<2x1xf32>
    %c5_111 = arith.constant 5 : index
    %c0_112 = arith.constant 0 : index
    %252 = memref.load %arg1[%c5_111, %c0_112] : memref<8x4xf32, #tpu.memory_space<smem>>
    %253 = vector.broadcast %252 : f32 to vector<2x1xf32>
    %254 = arith.mulf %176, %253 : vector<2x1xf32>
    %255 = arith.addf %251, %254 : vector<2x1xf32>
    %c6_113 = arith.constant 6 : index
    %c0_114 = arith.constant 0 : index
    %256 = memref.load %arg1[%c6_113, %c0_114] : memref<8x4xf32, #tpu.memory_space<smem>>
    %257 = vector.broadcast %256 : f32 to vector<2x1xf32>
    %258 = arith.mulf %204, %257 : vector<2x1xf32>
    %259 = arith.addf %255, %258 : vector<2x1xf32>
    %c7_115 = arith.constant 7 : index
    %c0_116 = arith.constant 0 : index
    %260 = memref.load %arg1[%c7_115, %c0_116] : memref<8x4xf32, #tpu.memory_space<smem>>
    %261 = vector.broadcast %260 : f32 to vector<2x1xf32>
    %262 = arith.mulf %232, %261 : vector<2x1xf32>
    %263 = arith.addf %259, %262 : vector<2x1xf32>
    %c0_117 = arith.constant 0 : index
    %c1_118 = arith.constant 1 : index
    %264 = memref.load %arg1[%c0_117, %c1_118] : memref<8x4xf32, #tpu.memory_space<smem>>
    %265 = vector.broadcast %264 : f32 to vector<2x1xf32>
    %266 = arith.mulf %36, %265 : vector<2x1xf32>
    %c1_119 = arith.constant 1 : index
    %c1_120 = arith.constant 1 : index
    %267 = memref.load %arg1[%c1_119, %c1_120] : memref<8x4xf32, #tpu.memory_space<smem>>
    %268 = vector.broadcast %267 : f32 to vector<2x1xf32>
    %269 = arith.mulf %64, %268 : vector<2x1xf32>
    %270 = arith.addf %266, %269 : vector<2x1xf32>
    %c2_121 = arith.constant 2 : index
    %c1_122 = arith.constant 1 : index
    %271 = memref.load %arg1[%c2_121, %c1_122] : memref<8x4xf32, #tpu.memory_space<smem>>
    %272 = vector.broadcast %271 : f32 to vector<2x1xf32>
    %273 = arith.mulf %92, %272 : vector<2x1xf32>
    %274 = arith.addf %270, %273 : vector<2x1xf32>
    %c3_123 = arith.constant 3 : index
    %c1_124 = arith.constant 1 : index
    %275 = memref.load %arg1[%c3_123, %c1_124] : memref<8x4xf32, #tpu.memory_space<smem>>
    %276 = vector.broadcast %275 : f32 to vector<2x1xf32>
    %277 = arith.mulf %120, %276 : vector<2x1xf32>
    %278 = arith.addf %274, %277 : vector<2x1xf32>
    %c4_125 = arith.constant 4 : index
    %c1_126 = arith.constant 1 : index
    %279 = memref.load %arg1[%c4_125, %c1_126] : memref<8x4xf32, #tpu.memory_space<smem>>
    %280 = vector.broadcast %279 : f32 to vector<2x1xf32>
    %281 = arith.mulf %148, %280 : vector<2x1xf32>
    %282 = arith.addf %278, %281 : vector<2x1xf32>
    %c5_127 = arith.constant 5 : index
    %c1_128 = arith.constant 1 : index
    %283 = memref.load %arg1[%c5_127, %c1_128] : memref<8x4xf32, #tpu.memory_space<smem>>
    %284 = vector.broadcast %283 : f32 to vector<2x1xf32>
    %285 = arith.mulf %176, %284 : vector<2x1xf32>
    %286 = arith.addf %282, %285 : vector<2x1xf32>
    %c6_129 = arith.constant 6 : index
    %c1_130 = arith.constant 1 : index
    %287 = memref.load %arg1[%c6_129, %c1_130] : memref<8x4xf32, #tpu.memory_space<smem>>
    %288 = vector.broadcast %287 : f32 to vector<2x1xf32>
    %289 = arith.mulf %204, %288 : vector<2x1xf32>
    %290 = arith.addf %286, %289 : vector<2x1xf32>
    %c7_131 = arith.constant 7 : index
    %c1_132 = arith.constant 1 : index
    %291 = memref.load %arg1[%c7_131, %c1_132] : memref<8x4xf32, #tpu.memory_space<smem>>
    %292 = vector.broadcast %291 : f32 to vector<2x1xf32>
    %293 = arith.mulf %232, %292 : vector<2x1xf32>
    %294 = arith.addf %290, %293 : vector<2x1xf32>
    %c0_133 = arith.constant 0 : index
    %c2_134 = arith.constant 2 : index
    %295 = memref.load %arg1[%c0_133, %c2_134] : memref<8x4xf32, #tpu.memory_space<smem>>
    %296 = vector.broadcast %295 : f32 to vector<2x1xf32>
    %297 = arith.mulf %36, %296 : vector<2x1xf32>
    %c1_135 = arith.constant 1 : index
    %c2_136 = arith.constant 2 : index
    %298 = memref.load %arg1[%c1_135, %c2_136] : memref<8x4xf32, #tpu.memory_space<smem>>
    %299 = vector.broadcast %298 : f32 to vector<2x1xf32>
    %300 = arith.mulf %64, %299 : vector<2x1xf32>
    %301 = arith.addf %297, %300 : vector<2x1xf32>
    %c2_137 = arith.constant 2 : index
    %c2_138 = arith.constant 2 : index
    %302 = memref.load %arg1[%c2_137, %c2_138] : memref<8x4xf32, #tpu.memory_space<smem>>
    %303 = vector.broadcast %302 : f32 to vector<2x1xf32>
    %304 = arith.mulf %92, %303 : vector<2x1xf32>
    %305 = arith.addf %301, %304 : vector<2x1xf32>
    %c3_139 = arith.constant 3 : index
    %c2_140 = arith.constant 2 : index
    %306 = memref.load %arg1[%c3_139, %c2_140] : memref<8x4xf32, #tpu.memory_space<smem>>
    %307 = vector.broadcast %306 : f32 to vector<2x1xf32>
    %308 = arith.mulf %120, %307 : vector<2x1xf32>
    %309 = arith.addf %305, %308 : vector<2x1xf32>
    %c4_141 = arith.constant 4 : index
    %c2_142 = arith.constant 2 : index
    %310 = memref.load %arg1[%c4_141, %c2_142] : memref<8x4xf32, #tpu.memory_space<smem>>
    %311 = vector.broadcast %310 : f32 to vector<2x1xf32>
    %312 = arith.mulf %148, %311 : vector<2x1xf32>
    %313 = arith.addf %309, %312 : vector<2x1xf32>
    %c5_143 = arith.constant 5 : index
    %c2_144 = arith.constant 2 : index
    %314 = memref.load %arg1[%c5_143, %c2_144] : memref<8x4xf32, #tpu.memory_space<smem>>
    %315 = vector.broadcast %314 : f32 to vector<2x1xf32>
    %316 = arith.mulf %176, %315 : vector<2x1xf32>
    %317 = arith.addf %313, %316 : vector<2x1xf32>
    %c6_145 = arith.constant 6 : index
    %c2_146 = arith.constant 2 : index
    %318 = memref.load %arg1[%c6_145, %c2_146] : memref<8x4xf32, #tpu.memory_space<smem>>
    %319 = vector.broadcast %318 : f32 to vector<2x1xf32>
    %320 = arith.mulf %204, %319 : vector<2x1xf32>
    %321 = arith.addf %317, %320 : vector<2x1xf32>
    %c7_147 = arith.constant 7 : index
    %c2_148 = arith.constant 2 : index
    %322 = memref.load %arg1[%c7_147, %c2_148] : memref<8x4xf32, #tpu.memory_space<smem>>
    %323 = vector.broadcast %322 : f32 to vector<2x1xf32>
    %324 = arith.mulf %232, %323 : vector<2x1xf32>
    %325 = arith.addf %321, %324 : vector<2x1xf32>
    %c0_149 = arith.constant 0 : index
    %c3_150 = arith.constant 3 : index
    %326 = memref.load %arg1[%c0_149, %c3_150] : memref<8x4xf32, #tpu.memory_space<smem>>
    %327 = vector.broadcast %326 : f32 to vector<2x1xf32>
    %328 = arith.mulf %36, %327 : vector<2x1xf32>
    %c1_151 = arith.constant 1 : index
    %c3_152 = arith.constant 3 : index
    %329 = memref.load %arg1[%c1_151, %c3_152] : memref<8x4xf32, #tpu.memory_space<smem>>
    %330 = vector.broadcast %329 : f32 to vector<2x1xf32>
    %331 = arith.mulf %64, %330 : vector<2x1xf32>
    %332 = arith.addf %328, %331 : vector<2x1xf32>
    %c2_153 = arith.constant 2 : index
    %c3_154 = arith.constant 3 : index
    %333 = memref.load %arg1[%c2_153, %c3_154] : memref<8x4xf32, #tpu.memory_space<smem>>
    %334 = vector.broadcast %333 : f32 to vector<2x1xf32>
    %335 = arith.mulf %92, %334 : vector<2x1xf32>
    %336 = arith.addf %332, %335 : vector<2x1xf32>
    %c3_155 = arith.constant 3 : index
    %c3_156 = arith.constant 3 : index
    %337 = memref.load %arg1[%c3_155, %c3_156] : memref<8x4xf32, #tpu.memory_space<smem>>
    %338 = vector.broadcast %337 : f32 to vector<2x1xf32>
    %339 = arith.mulf %120, %338 : vector<2x1xf32>
    %340 = arith.addf %336, %339 : vector<2x1xf32>
    %c4_157 = arith.constant 4 : index
    %c3_158 = arith.constant 3 : index
    %341 = memref.load %arg1[%c4_157, %c3_158] : memref<8x4xf32, #tpu.memory_space<smem>>
    %342 = vector.broadcast %341 : f32 to vector<2x1xf32>
    %343 = arith.mulf %148, %342 : vector<2x1xf32>
    %344 = arith.addf %340, %343 : vector<2x1xf32>
    %c5_159 = arith.constant 5 : index
    %c3_160 = arith.constant 3 : index
    %345 = memref.load %arg1[%c5_159, %c3_160] : memref<8x4xf32, #tpu.memory_space<smem>>
    %346 = vector.broadcast %345 : f32 to vector<2x1xf32>
    %347 = arith.mulf %176, %346 : vector<2x1xf32>
    %348 = arith.addf %344, %347 : vector<2x1xf32>
    %c6_161 = arith.constant 6 : index
    %c3_162 = arith.constant 3 : index
    %349 = memref.load %arg1[%c6_161, %c3_162] : memref<8x4xf32, #tpu.memory_space<smem>>
    %350 = vector.broadcast %349 : f32 to vector<2x1xf32>
    %351 = arith.mulf %204, %350 : vector<2x1xf32>
    %352 = arith.addf %348, %351 : vector<2x1xf32>
    %c7_163 = arith.constant 7 : index
    %c3_164 = arith.constant 3 : index
    %353 = memref.load %arg1[%c7_163, %c3_164] : memref<8x4xf32, #tpu.memory_space<smem>>
    %354 = vector.broadcast %353 : f32 to vector<2x1xf32>
    %355 = arith.mulf %232, %354 : vector<2x1xf32>
    %356 = arith.addf %352, %355 : vector<2x1xf32>
    %c0_165 = arith.constant 0 : index
    %357 = memref.load %arg2[%c0_165] : memref<8xf32, #tpu.memory_space<smem>>
    %358 = vector.broadcast %357 : f32 to vector<2x1xf32>
    %359 = arith.mulf %36, %358 : vector<2x1xf32>
    %c1_166 = arith.constant 1 : index
    %360 = memref.load %arg2[%c1_166] : memref<8xf32, #tpu.memory_space<smem>>
    %361 = vector.broadcast %360 : f32 to vector<2x1xf32>
    %362 = arith.mulf %64, %361 : vector<2x1xf32>
    %363 = arith.addf %359, %362 : vector<2x1xf32>
    %c2_167 = arith.constant 2 : index
    %364 = memref.load %arg2[%c2_167] : memref<8xf32, #tpu.memory_space<smem>>
    %365 = vector.broadcast %364 : f32 to vector<2x1xf32>
    %366 = arith.mulf %92, %365 : vector<2x1xf32>
    %367 = arith.addf %363, %366 : vector<2x1xf32>
    %c3_168 = arith.constant 3 : index
    %368 = memref.load %arg2[%c3_168] : memref<8xf32, #tpu.memory_space<smem>>
    %369 = vector.broadcast %368 : f32 to vector<2x1xf32>
    %370 = arith.mulf %120, %369 : vector<2x1xf32>
    %371 = arith.addf %367, %370 : vector<2x1xf32>
    %c4_169 = arith.constant 4 : index
    %372 = memref.load %arg2[%c4_169] : memref<8xf32, #tpu.memory_space<smem>>
    %373 = vector.broadcast %372 : f32 to vector<2x1xf32>
    %374 = arith.mulf %148, %373 : vector<2x1xf32>
    %375 = arith.addf %371, %374 : vector<2x1xf32>
    %c5_170 = arith.constant 5 : index
    %376 = memref.load %arg2[%c5_170] : memref<8xf32, #tpu.memory_space<smem>>
    %377 = vector.broadcast %376 : f32 to vector<2x1xf32>
    %378 = arith.mulf %176, %377 : vector<2x1xf32>
    %379 = arith.addf %375, %378 : vector<2x1xf32>
    %c6_171 = arith.constant 6 : index
    %380 = memref.load %arg2[%c6_171] : memref<8xf32, #tpu.memory_space<smem>>
    %381 = vector.broadcast %380 : f32 to vector<2x1xf32>
    %382 = arith.mulf %204, %381 : vector<2x1xf32>
    %383 = arith.addf %379, %382 : vector<2x1xf32>
    %c7_172 = arith.constant 7 : index
    %384 = memref.load %arg2[%c7_172] : memref<8xf32, #tpu.memory_space<smem>>
    %385 = vector.broadcast %384 : f32 to vector<2x1xf32>
    %386 = arith.mulf %232, %385 : vector<2x1xf32>
    %387 = arith.addf %383, %386 : vector<2x1xf32>
    %388 = vector.broadcast %263 : vector<2x1xf32> to vector<2x256xf32>
    %389 = arith.mulf %1, %388 : vector<2x256xf32>
    %390 = vector.broadcast %294 : vector<2x1xf32> to vector<2x256xf32>
    %391 = arith.mulf %3, %390 : vector<2x256xf32>
    %392 = arith.addf %389, %391 : vector<2x256xf32>
    %393 = vector.broadcast %325 : vector<2x1xf32> to vector<2x256xf32>
    %394 = arith.mulf %5, %393 : vector<2x256xf32>
    %395 = arith.addf %392, %394 : vector<2x256xf32>
    %396 = vector.broadcast %356 : vector<2x1xf32> to vector<2x256xf32>
    %397 = arith.mulf %7, %396 : vector<2x256xf32>
    %398 = arith.addf %395, %397 : vector<2x256xf32>
    %399 = vector.broadcast %387 : vector<2x1xf32> to vector<2x256xf32>
    %400 = arith.addf %398, %399 : vector<2x256xf32>
    %cst_173 = arith.constant dense<0x7F800000> : vector<2xf32>
    %401 = vector.multi_reduction <minimumf>, %400, %cst_173 [1] : vector<2x256xf32> to vector<2xf32>
    %402 = vector.shape_cast %401 : vector<2xf32> to vector<2x1xf32>
    %cst_174 = arith.constant dense<0xFF800000> : vector<2xf32>
    %403 = vector.multi_reduction <maximumf>, %400, %cst_174 [1] : vector<2x256xf32> to vector<2xf32>
    %404 = vector.shape_cast %403 : vector<2xf32> to vector<2x1xf32>
    %405 = arith.subf %404, %402 : vector<2x1xf32>
    %cst_175 = arith.constant 9.99999997E-7 : f32
    %406 = vector.broadcast %cst_175 : f32 to vector<2x1xf32>
    %407 = arith.addf %405, %406 : vector<2x1xf32>
    %408 = tpu.reciprocal %407 {approx = true} : vector<2x1xf32> -> vector<2x1xf32>
    %c0_176 = arith.constant 0 : index
    %c0_177 = arith.constant 0 : index
    %409 = vector.load %arg5[%c0_176, %c0_177] : memref<2x256xf32, #tpu.memory_space<vmem>>, vector<2x256xf32>
    %410 = vector.broadcast %402 : vector<2x1xf32> to vector<2x256xf32>
    %411 = arith.subf %400, %410 : vector<2x256xf32>
    %412 = arith.mulf %409, %411 : vector<2x256xf32>
    %413 = arith.mulf %412, %412 : vector<2x256xf32>
    %cst_178 = arith.constant dense<0.000000e+00> : vector<2xf32>
    %414 = vector.multi_reduction <add>, %413, %cst_178 [1] : vector<2x256xf32> to vector<2xf32>
    %415 = vector.shape_cast %414 : vector<2xf32> to vector<2x1xf32>
    %416 = arith.mulf %408, %408 : vector<2x1xf32>
    %417 = arith.mulf %415, %416 : vector<2x1xf32>
    %418 = vector.shape_cast %417 : vector<2x1xf32> to vector<1x2x1xf32>
    %cst_179 = arith.constant dense<0.000000e+00> : vector<1xf32>
    %419 = vector.multi_reduction <add>, %418, %cst_179 [1, 2] : vector<1x2x1xf32> to vector<1xf32>
    %420 = vector.shape_cast %419 : vector<1xf32> to vector<1x1x1xf32>
    %421 = vector.extract %420[0, 0, 0] : f32 from vector<1x1x1xf32>
    %422 = vector.broadcast %421 : f32 to vector<1x8x128xf32>
    %c0_180 = arith.constant 0 : index
    %c0_181 = arith.constant 0 : index
    %c0_182 = arith.constant 0 : index
    %423 = vector.load %arg6[%c0_180, %c0_181, %c0_182] : memref<1x8x128xf32, #tpu.memory_space<vmem>>, vector<1x8x128xf32>
    tpu.vector_store %arg6[%c0_180, %c0_181, %c0_182], %422 {strides = array<i32>} : memref<1x8x128xf32, #tpu.memory_space<vmem>>, vector<1x8x128xf32>,
    return
  }
  func.func @transform_0(%arg0: i32) -> (i32, i32) {
    %c0_i32 = arith.constant 0 : i32
    %c0_i32_0 = arith.constant 0 : i32
    %c0_i32_1 = arith.constant 0 : i32
    return %c0_i32, %c0_i32_0 : i32, i32
  }
  func.func @transform_1(%arg0: i32) -> i32 {
    %c0_i32 = arith.constant 0 : i32
    %c0_i32_0 = arith.constant 0 : i32
    return %c0_i32 : i32
  }
  func.func @transform_2(%arg0: i32) -> (i32, i32, i32) {
    %c0_i32 = arith.constant 0 : i32
    %c0_i32_0 = arith.constant 0 : i32
    %c0_i32_1 = arith.constant 0 : i32
    return %c0_i32, %arg0, %c0_i32_0 : i32, i32, i32
  }
  func.func @transform_3(%arg0: i32) -> (i32, i32) {
    %c0_i32 = arith.constant 0 : i32
    %c0_i32_0 = arith.constant 0 : i32
    return %arg0, %c0_i32 : i32, i32
  }
  func.func @transform_4(%arg0: i32) -> (i32, i32) {
    %c0_i32 = arith.constant 0 : i32
    %c0_i32_0 = arith.constant 0 : i32
    return %arg0, %c0_i32 : i32, i32
  }
  func.func @transform_5(%arg0: i32) -> (i32, i32, i32) {
    %c0_i32 = arith.constant 0 : i32
    %c0_i32_0 = arith.constant 0 : i32
    %c0_i32_1 = arith.constant 0 : i32
    return %arg0, %c0_i32, %c0_i32_0 : i32, i32, i32
  }
}

</mosaic_0001>

<bundles_post_ra>
// kernel: tpu_custom_call.1
= control target key start
LH: loop header
LB: loop body
LE: loop exit
PB: predicated region body
PF: predicated region fallthrough
CT: control target
= control target key end

     0   :  { %s1359_s0 = inlined_call_operand.vmem [shape: f32[8,4], index: 0, kind: input, shape index: {}]   ;;  %s1360_s1 = inlined_call_operand.vmem [shape: f32[8], index: 1, kind: input, shape index: {}]   ;;  %s1361_s2 = inlined_call_operand.vmem [shape: f32[4,2,256], index: 2, kind: input, shape index: {}]   ;;  %s1362_s3 = inlined_call_operand.vmem [shape: f32[2,8], index: 3, kind: input, shape index: {}]   ;;  %s1363_s4 = inlined_call_operand.vmem [shape: f32[2,256], index: 4, kind: input, shape index: {}]   ;;  %s1364_s5 = inlined_call_operand.hbm [shape: f32[1,8,128], index: 5, kind: output, shape index: {}]  }
   0x1   :  { %1378 = sst [smem:[#allocation23_spill]] %s1363_s4 }
   0x2   :  { %1379 = sst [smem:[#allocation24_spill]] %s1364_s5 }
   0x3   :  { %10 = vsyncpa [#allocation4], 0 }
   0x4   :  { %11 = vsyncpa [#allocation6], 0 }
   0x5   :  { %12 = vsyncpa [#allocation3], 0  ;;  %s19_s20 = sshll.u32 %s1359_s0, 4  ;;  %s29_s23 = sshll.u32 %s1360_s1, 4  ;;  %s20_s20 = int_to_ptr.vmem [resolvable:$true] %s19_s20  ;;  %s30_s23 = int_to_ptr.vmem [resolvable:$true] %s29_s23 }
   0x6   :  { %s803_s24 = scalar_lea.vmem %s20_s20, 128  ;;  %p808_p1 = scmp.lt.s32.totalorder %s20_s20, %s20_s20 }
   0x7   :  { %p804_p0 = scmp.ne.s32.totalorder %s20_s20, %s803_s24  ;;  %p809_p2 = scmp.lt.s32.totalorder %s803_s24, %s803_s24 }
   0x9   :  { %p810_p3 = por %p809_p2, %p808_p1 }
   0xb   :  { %p811_p4 = pnand %p810_p3, %p804_p0 }
   0xd   :  { %814 = shalt.err (!%p811_p4)
}
   0xe   :  { %s855_s25 = smov [#allocation2]   ;;  %s815_s26 = scalar_lea.vmem %s30_s23, 16 }
   0xf   :  { %22 = dma.vmem_to_smem %s20_s20, 128, %s855_s25, [#allocation4]  }
  0x10   :  { %p816_p5 = scmp.ne.s32.totalorder %s30_s23, %s815_s26  ;;  %p820_p6 = scmp.lt.s32.totalorder %s30_s23, %s30_s23 }
  0x11   :  { %p821_p7 = scmp.lt.s32.totalorder %s815_s26, %s815_s26 }
  0x13   :  { %p822_p8 = por %p821_p7, %p820_p6 }
  0x15   :  { %p823_p9 = pnand %p822_p8, %p816_p5 }
  0x17   :  { %826 = shalt.err (!%p823_p9)
}
  0x18   :  { %s856_s0 = smov [#allocation5]  }
  0x19   :  { %32 = dma.vmem_to_smem %s30_s23, 16, %s856_s0, [#allocation6]  }
  0x1a   :  { %849 = dma.done.wait [#allocation4], 128  }
  0x1b   :  { %850 = vsyncadd [#allocation4], 4294967168 }
  0x1c   :  { %851 = dma.done.wait [#allocation6], 16  }
  0x1d   :  { %852 = vsyncadd [#allocation6], 4294967280 }
  0x1e   :  { %45 = sfence }
  0x1f   :  { %v79_v0 = vlaneseq  ;;  %v857_v1 = vmov 1983009808   ;;  %s905_s1 = sld [smem:[#allocation2 + $0x80]]  ;;  %s907_s27 = sld [smem:[#allocation2 + $0x81]]  ;;  %v916_v3 = vld [vmem:[%s1361_s2] sm:$0xf] }
  0x20   :  { %v77_v2 = vunpack.c.l.s4 %v857_v1  ;;  %s909_s28 = sld [smem:[#allocation2 + $0x82]]  ;;  %s911_s29 = sld [smem:[#allocation2 + $0x83]]  ;;  %v927_v6 = vld [vmem:[%s1361_s2 + $0x4] sm:$0xf]  ;;  %v936_v7 = vld [vmem:[%s1361_s2 + $0x8] sm:$0xf] }
  0x21   :  { %v918_v5 = vshrl.u32 %v79_v0, 7  ;;  %s920_s7 = sld [smem:[#allocation5 + $0x1]]  ;;  %s922_s8 = sld [smem:[#allocation2 + $0x100]]  ;;  %v945_v8 = vld [vmem:[%s1361_s2 + $0xc] sm:$0xf]  ;;  %vm86_vm0 = vcmask 1041408  }
  0x22   :  { %v78_v4 = vunpack.c.0.s8 %v77_v2  ;;  %s929_s11 = sld [smem:[#allocation2 + $0x101]]  ;;  %s931_s12 = sld [smem:[#allocation2 + $0x102]]  ;;  %v858_v55 = vmov 0.0   ;;  %vm705_vm9 = vcmask 1024  }
  0x23   :  { %s938_s15 = sld [smem:[#allocation2 + $0x103]]  ;;  %s940_s16 = sld [smem:[#allocation5 + $0x2]] }
  0x24   :  { %s947_s19 = sld [smem:[#allocation2 + $0x180]]  ;;  %s949_s20 = sld [smem:[#allocation2 + $0x181]]  ;;  %v952_v9 = vsub.s32 %v78_v4, %v918_v5 }
  0x25   :  { %v95_v10 = vstv %s905_s1  ;;  %v98_v11 = vstv %s907_s27  ;;  %s956_s21 = sld [smem:[#allocation2 + $0x182]]  ;;  %s958_s22 = sld [smem:[#allocation2 + $0x183]] }
  0x26   :  { %v96_v12 = vmul.f32 %v95_v10, %v916_v3  ;;  %v99_v13 = vmul.f32 %v927_v6, %v98_v11  ;;  %v102_v14 = vstv %s909_s28  ;;  %v106_v15 = vstv %s911_s29  ;;  %s968_s2 = sld [smem:[#allocation5 + $0x3]]  ;;  %s970_s23 = sld [smem:[#allocation2 + $0x200]] }
  0x27   :  { %1380 = sst [smem:[#allocation11_spill]] %s920_s7  ;;  %v103_v16 = vmul.f32 %v936_v7, %v102_v14  ;;  %v107_v17 = vmul.f32 %v945_v8, %v106_v15  ;;  %v110_v18 = vstv %s920_s7  ;;  %v134_v19 = vstv %s922_s8  ;;  %s980_s24 = sld [smem:[#allocation2 + $0x201]] }
  0x28   :  { %s982_s25 = sld [smem:[#allocation2 + $0x202]]  ;;  %v100_v20 = vadd.f32 %v99_v13, %v96_v12  ;;  %v135_v21 = vmul.f32 %v134_v19, %v916_v3  ;;  %v137_v22 = vstv %s929_s11  ;;  %v141_v23 = vstv %s931_s12  ;;  %s989_s26 = sld [smem:[#allocation2 + $0x203]] }
  0x29   :  { %1381 = sst [smem:[#allocation12_spill]] %s940_s16  ;;  %s991_s0 = sld [smem:[#allocation5 + $0x4]]  ;;  %v138_v24 = vmul.f32 %v927_v6, %v137_v22  ;;  %v142_v25 = vmul.f32 %v936_v7, %v141_v23  ;;  %v145_v26 = vstv %s938_s15  ;;  %v149_v27 = vstv %s940_s16 }
  0x2a   :  { %s1001_s30 = sld [smem:[#allocation2 + $0x280]]  ;;  %v104_v28 = vadd.f32 %v103_v16, %v100_v20  ;;  %v146_v29 = vmul.f32 %v945_v8, %v145_v26  ;;  %v173_v30 = vstv %s947_s19  ;;  %v176_v31 = vstv %s949_s20  ;;  %s1008_s6 = sld [smem:[#allocation2 + $0x281]] }
  0x2b   :  { %v139_v32 = vadd.f32 %v138_v24, %v135_v21  ;;  %v174_v33 = vmul.f32 %v173_v30, %v916_v3  ;;  %v177_v34 = vmul.f32 %v927_v6, %v176_v31  ;;  %v180_v35 = vstv %s956_s21  ;;  %s1022_s9 = sld [smem:[#allocation2 + $0x282]]  ;;  %s1035_s10 = sld [smem:[#allocation2 + $0x283]] }
  0x2c   :  { %1382 = sst [smem:[#allocation13_spill]] %s968_s2  ;;  %v108_v36 = vadd.f32 %v107_v17, %v104_v28  ;;  %v181_v37 = vmul.f32 %v936_v7, %v180_v35  ;;  %v184_v38 = vstv %s958_s22  ;;  %v188_v39 = vstv %s968_s2  ;;  %s1046_s13 = sld [smem:[#allocation5 + $0x5]] }
  0x2d   :  { %v143_v40 = vadd.f32 %v142_v25, %v139_v32  ;;  %v178_v41 = vadd.f32 %v177_v34, %v174_v33  ;;  %v185_v42 = vmul.f32 %v945_v8, %v184_v38  ;;  %v212_v43 = vstv %s970_s23  ;;  %s1051_s14 = sld [smem:[#allocation2 + $0x300]]  ;;  %s1066_s17 = sld [smem:[#allocation2 + $0x301]] }
  0x2e   :  { %1383 = sst [smem:[#allocation14_spill]] %s982_s25  ;;  %v111_v44 = vadd.f32 %v110_v18, %v108_v36  ;;  %v213_v45 = vmul.f32 %v212_v43, %v916_v3  ;;  %v215_v46 = vstv %s980_s24  ;;  %v219_v47 = vstv %s982_s25  ;;  %s1068_s18 = sld [smem:[#allocation2 + $0x302]] }
  0x2f   :  { %1384 = sst [smem:[#allocation15_spill]] %s989_s26  ;;  %v147_v48 = vadd.f32 %v146_v29, %v143_v40  ;;  %v182_v49 = vadd.f32 %v181_v37, %v178_v41  ;;  %v216_v50 = vmul.f32 %v927_v6, %v215_v46  ;;  %v220_v51 = vmul.f32 %v936_v7, %v219_v47  ;;  %s1073_s5 = sld [smem:[#allocation2 + $0x303]] }
  0x30   :  { %1385 = sst [smem:[#allocation16_spill]] %s991_s0  ;;  %vm112_vm1 = vcmp.gt.f32.partialorder %v111_v44, 0.0  ;;  %v223_v52 = vstv %s989_s26  ;;  %v227_v53 = vstv %s991_s0  ;;  %v251_v54 = vstv %s1001_s30  ;;  %s1076_s4 = sld [smem:[#allocation5 + $0x6]] }
  0x31   :  { %1386 = sst [smem:[#allocation17_spill]] %s1022_s9  ;;  %v746_v56 = vsel %vm112_vm1, 1.0, %v858_v55  ;;  %v150_v57 = vadd.f32 %v149_v27, %v147_v48  ;;  %v186_v58 = vadd.f32 %v185_v42, %v182_v49  ;;  %v217_v59 = vadd.f32 %v216_v50, %v213_v45  ;;  %s1078_s2 = sld [smem:[#allocation2 + $0x380]] }
  0x32   :  { %1387 = sst [smem:[#allocation18_spill]] %s1035_s10  ;;  %v122_v60 = vrot.slane %v746_v56, %v952_v9  ;;  %v224_v61 = vmul.f32 %v945_v8, %v223_v52  ;;  %v252_v62 = vmul.f32 %v251_v54, %v916_v3  ;;  %v254_v63 = vstv %s1008_s6  ;;  %s1088_s26 = sld [smem:[#allocation2 + $0x381]] }
  0x33   :  { %1388 = sst [smem:[#allocation19_spill]] %s1051_s14  ;;  %vm151_vm2 = vcmp.gt.f32.partialorder %v150_v57, 0.0  ;;  %v189_v0 = vadd.f32 %v188_v39, %v186_v58  ;;  %v221_v1 = vadd.f32 %v220_v51, %v217_v59  ;;  %v255_v2 = vmul.f32 %v927_v6, %v254_v63  ;;  %s1096_s16 = sld [smem:[#allocation2 + $0x382]] }
  0x34   :  { %v123_v4 = vcombine.high %v122_v60, %v122_v60  ;;  %v126_v12 = vsel %vm86_vm0, %v122_v60, 0.0  ;;  %v752_v13 = vsel %vm151_vm2, 1.0, %v858_v55  ;;  %v258_v16 = vstv %s1022_s9  ;;  %s1101_s0 = sld [smem:[#allocation2 + $0x383]]  ;;  %s1103_s7 = sld [smem:[#allocation5 + $0x7]] }
  0x35   :  { %1389 = sst [smem:[#allocation20_spill]] %s1073_s5  ;;  %v161_v17 = vrot.slane %v752_v13, %v952_v9  ;;  %vm190_vm3 = vcmp.gt.f32.partialorder %v189_v0, 0.0  ;;  %v225_v20 = vadd.f32 %v224_v61, %v221_v1  ;;  %v256_v21 = vadd.f32 %v255_v2, %v252_v62  ;;  %s1128_s25 = sld [smem:[#allocation2 + $0x2]] }
  0x36   :  { %v127_v24 = vsel %vm86_vm0, %v123_v4, 0.0  ;;  %v758_v25 = vsel %vm190_vm3, 1.0, %v858_v55  ;;  %v259_v28 = vmul.f32 %v936_v7, %v258_v16  ;;  %v262_v29 = vstv %s1035_s10  ;;  %s1112_s10 = sld [smem:[#allocation2]]  ;;  %s1114_s9 = sld [smem:[#allocation2 + $0x1]] }
  0x37   :  { %v128_v32 = vadd.f32 %v127_v24, %v126_v12  ;;  %v162_v33 = vcombine.high %v161_v17, %v161_v17  ;;  %v165_v34 = vsel %vm86_vm0, %v161_v17, 0.0  ;;  %v200_v36 = vrot.slane %v758_v25, %v952_v9  ;;  %s861_s1 = smov 125   ;;  %s862_s27 = smov 124  }
  0x38   :  { %v228_v37 = vadd.f32 %v227_v53, %v225_v20  ;;  %v260_v40 = vadd.f32 %v259_v28, %v256_v21  ;;  %v263_v41 = vmul.f32 %v945_v8, %v262_v29  ;;  %v266_v42 = vstv %s1046_s13  ;;  %s863_s8 = smov 123   ;;  %s864_s19 = smov 122  }
  0x39   :  { %129 = vadd.xlane.f32.xlu0 %v128_v32  ;;  %v166_v44 = vsel %vm86_vm0, %v162_v33, 0.0  ;;  %v201_v45 = vcombine.high %v200_v36, %v200_v36  ;;  %v204_v48 = vsel %vm86_vm0, %v200_v36, 0.0  ;;  %v290_v49 = vstv %s1051_s14  ;;  %s1130_s14 = sld [smem:[#allocation2 + $0x3]]  ;;  %s866_s24 = smov 121  }
  0x3a   :  { %v167_v50 = vadd.f32 %v166_v44, %v165_v34  ;;  %vm229_vm4 = vcmp.gt.f32.partialorder %v228_v37, 0.0  ;;  %v264_v51 = vadd.f32 %v263_v41, %v260_v40  ;;  %v291_v56 = vmul.f32 %v290_v49, %v916_v3 }
  0x3b   :  { %v205_v57 = vsel %vm86_vm0, %v201_v45, 0.0  ;;  %v764_v58 = vsel %vm229_vm4, 1.0, %v858_v55  ;;  %v293_v59 = vstv %s1066_s17  ;;  %v297_v60 = vstv %s1068_s18 }
  0x3c   :  { %v206_v61 = vadd.f32 %v205_v57, %v204_v48  ;;  %v239_v62 = vrot.slane %v764_v58, %v952_v9  ;;  %v267_v0 = vadd.f32 %v266_v42, %v264_v51  ;;  %v294_v1 = vmul.f32 %v927_v6, %v293_v59 }
  0x3d   :  { %168 = vadd.xlane.f32.xlu0 %v167_v50  ;;  %v298_v2 = vmul.f32 %v936_v7, %v297_v60  ;;  %v301_v4 = vstv %s1073_s5  ;;  %v305_v12 = vstv %s1076_s4  ;;  %v329_v13 = vstv %s1078_s2  ;;  %s1149_s5 = sld [smem:[#allocation5]] }
  0x3e   :  { %207 = vadd.xlane.f32.xlu1 %v206_v61  ;;  %v240_v17 = vcombine.high %v239_v62, %v239_v62  ;;  %v243_v20 = vsel %vm86_vm0, %v239_v62, 0.0  ;;  %vm268_vm5 = vcmp.gt.f32.partialorder %v267_v0, 0.0  ;;  %v295_v21 = vadd.f32 %v294_v1, %v291_v56 }
  0x3f   :  { %1390 = sst [smem:[#allocation21_spill]] %s1130_s14  ;;  %v770_v24 = vsel %vm268_vm5, 1.0, %v858_v55  ;;  %v302_v25 = vmul.f32 %v945_v8, %v301_v4  ;;  %v330_v28 = vmul.f32 %v329_v13, %v916_v3  ;;  %v332_v32 = vstv %s1088_s26  ;;  %s868_s26 = smov [#allocation7]  }
  0x40   :  { %v244_v33 = vsel %vm86_vm0, %v240_v17, 0.0  ;;  %v278_v34 = vrot.slane %v770_v24, %v952_v9  ;;  %v299_v36 = vadd.f32 %v298_v2, %v295_v21  ;;  %v333_v37 = vmul.f32 %v927_v6, %v332_v32 }
  0x41   :  { %v245_v40 = vadd.f32 %v244_v33, %v243_v20  ;;  %v336_v41 = vstv %s1096_s16  ;;  %v340_v44 = vstv %s1101_s0  ;;  %v344_v45 = vstv %s1103_s7  ;;  %s724_s0 = sshll.u32 %s868_s26, 4  ;;  %s725_s0 = int_to_ptr.vmem [resolvable:$true] %s724_s0 }
  0x42   :  { %v279_v48 = vcombine.high %v278_v34, %v278_v34  ;;  %v282_v50 = vsel %vm86_vm0, %v278_v34, 0.0  ;;  %v303_v51 = vadd.f32 %v302_v25, %v299_v36  ;;  %v334_v56 = vadd.f32 %v333_v37, %v330_v28  ;;  %p832_p11 = scmp.lt.s32.totalorder %s725_s0, %s725_s0 }
  0x43   :  { %1391 = sst [smem:[#allocation22_spill]] %s1149_s5  ;;  %246 = vadd.xlane.f32.xlu1 %v245_v40  ;;  %v337_v57 = vmul.f32 %v936_v7, %v336_v41  ;;  %v341_v58 = vmul.f32 %v945_v8, %v340_v44  ;;  %v55_v61 = vstv %s1112_s10  ;;  %v58_v62 = vstv %s1114_s9  ;;  %s827_s9 = scalar_lea.vmem %s725_s0, 128 }
  0x44   :  { %v283_v0 = vsel %vm86_vm0, %v279_v48, 0.0  ;;  %v306_v1 = vadd.f32 %v305_v12, %v303_v51  ;;  %v56_v2 = vmul.f32 %v55_v61, %v916_v3  ;;  %v59_v17 = vmul.f32 %v927_v6, %v58_v62  ;;  %p828_p10 = scmp.ne.s32.totalorder %s725_s0, %s827_s9  ;;  %p833_p12 = scmp.lt.s32.totalorder %s827_s9, %s827_s9 }
  0x45   :  { %v284_v20 = vadd.f32 %v283_v0, %v282_v50  ;;  %v338_v21 = vadd.f32 %v337_v57, %v334_v56  ;;  %v62_v24 = vstv %s1128_s25  ;;  %v66_v25 = vstv %s1130_s14  ;;  %s1404_s25 = sld [smem:[#allocation23_spill]] }
  0x46   :  { %vm307_vm6 = vcmp.gt.f32.partialorder %v306_v1, 0.0  ;;  %v60_v28 = vadd.f32 %v59_v17, %v56_v2  ;;  %v63_v33 = vmul.f32 %v936_v7, %v62_v24  ;;  %v67_v34 = vmul.f32 %v945_v8, %v66_v25  ;;  %p834_p13 = por %p833_p12, %p832_p11 }
  0x47   :  { %285 = vadd.xlane.f32.xlu0 %v284_v20  ;;  %v776_v36 = vsel %vm307_vm6, 1.0, %v858_v55  ;;  %v342_v37 = vadd.f32 %v341_v58, %v338_v21  ;;  %v70_v51 = vstv %s1149_s5  ;;  %s860_s5 = smov 126  }
  0x48   :  { %v317_v40 = vrot.slane %v776_v36, %v952_v9  ;;  %v64_v48 = vadd.f32 %v63_v33, %v60_v28  ;;  %p835_p0 = pnand %p834_p13, %p828_p10 }
  0x49   :  { %v345_v50 = vadd.f32 %v344_v45, %v342_v37 }
  0x4a   :  { %v318_v56 = vcombine.high %v317_v40, %v317_v40  ;;  %v321_v57 = vsel %vm86_vm0, %v317_v40, 0.0  ;;  %v68_v0 = vadd.f32 %v67_v34, %v64_v48 }
  0x4b   :  { %vm346_vm7 = vcmp.gt.f32.partialorder %v345_v50, 0.0 }
  0x4c   :  { %v322_v1 = vsel %vm86_vm0, %v318_v56, 0.0  ;;  %v782_v2 = vsel %vm346_vm7, 1.0, %v858_v55  ;;  %v71_v17 = vadd.f32 %v70_v51, %v68_v0 }
  0x4d   :  { %v323_v20 = vadd.f32 %v322_v1, %v321_v57  ;;  %v356_v58 = vrot.slane %v782_v2, %v952_v9 }
  0x4e   :  { %vm72_vm8 = vcmp.gt.f32.partialorder %v71_v17, 0.0 }
  0x4f   :  { %324 = vadd.xlane.f32.xlu1 %v323_v20  ;;  %v357_v21 = vcombine.high %v356_v58, %v356_v58  ;;  %v360_v28 = vsel %vm86_vm0, %v356_v58, 0.0  ;;  %v740_v33 = vsel %vm72_vm8, 1.0, %v858_v55  ;;  %v1197_v55 = vld [vmem:[%s1362_s3] sm:$0x3]  ;;  %s859_s3 = smov 127  }
  0x50   :  { %v82_v34 = vrot.slane %v740_v33, %v952_v9 }
  0x51   :  { %v361_v36 = vsel %vm86_vm0, %v357_v21, 0.0 }
  0x52   :  { %v362_v37 = vadd.f32 %v361_v36, %v360_v28  ;;  %v83_v40 = vcombine.high %v82_v34, %v82_v34  ;;  %v87_v48 = vsel %vm86_vm0, %v82_v34, 0.0 }
  0x54   :  { %363 = vadd.xlane.f32.xlu0 %v362_v37  ;;  %v88_v50 = vsel %vm86_vm0, %v83_v40, 0.0 }
  0x55   :  { %v89_v56 = vadd.f32 %v88_v50, %v87_v48 }
  0x57   :  { %90 = vadd.xlane.f32.xlu1 %v89_v56 }
  0xc6   :  { %v130_v57 = vpop.xlane.xlu0 %129 }
  0xc7   :  { %v131_v0 = vmul.f32 1.5258789e-05, %v130_v57 }
  0xc9   :  { %v1200_v1 = vmul.f32 %v131_v0, %v1197_v55 }
  0xca   :  { %v169_v2 = vpop.xlane.xlu0 %168 }
  0xcb   :  { %v170_v17 = vmul.f32 1.5258789e-05, %v169_v2  ;;  %v368_v20 = vmul.f32 %v1200_v1, %v95_v10  ;;  %v411_v58 = vmul.f32 %v1200_v1, %v98_v11  ;;  %v208_v21 = vpop.xlane.xlu1 %207  ;;  %v454_v10 = vmul.f32 %v1200_v1, %v102_v14 }
  0xcc   :  { %v209_v28 = vmul.f32 1.5258789e-05, %v208_v21 }
  0xcd   :  { %v171_v33 = vmul.f32 %v170_v17, %v1197_v55  ;;  %370 = vrot.lane.b32.xlu0 %v368_v20, %s859_s3  ;;  %413 = vrot.lane.b32.xlu1 %v411_v58, %s859_s3 }
  0xce   :  { %v1212_v34 = vmul.f32 %v209_v28, %v1197_v55 }
  0xcf   :  { %v374_v11 = vmul.f32 %v171_v33, %v134_v19  ;;  %v417_v48 = vmul.f32 %v171_v33, %v137_v22  ;;  %v460_v57 = vmul.f32 %v171_v33, %v141_v23  ;;  %v503_v2 = vmul.f32 %v171_v33, %v145_v26 }
  0xd0   :  { %v247_v36 = vpop.xlane.xlu1 %246  ;;  %v423_v37 = vmul.f32 %v1212_v34, %v176_v31  ;;  %v380_v19 = vmul.f32 %v1212_v34, %v173_v30  ;;  %v497_v31 = vmul.f32 %v1200_v1, %v106_v15  ;;  %v466_v17 = vmul.f32 %v1212_v34, %v180_v35 }
  0xd1   :  { %456 = vrot.lane.b32.xlu0 %v454_v10, %s859_s3  ;;  %376 = vrot.lane.b32.xlu1 %v374_v11, %s860_s5  ;;  %v248_v40 = vmul.f32 1.5258789e-05, %v247_v36  ;;  %v509_v20 = vmul.f32 %v1212_v34, %v184_v38  ;;  %v865_v38 = vmov 0   ;;  %v546_v28 = vmul.f32 %v171_v33, %v149_v27 }
  0xd2   :  { %800 = vset.pattern.permute.xlu0 %v865_v38  ;;  %799 = vset.pattern.permute.xlu1 %v865_v38 }
  0xd3   :  { %v249_v14 = vmul.f32 %v248_v40, %v1197_v55 }
  0xd4   :  { %v286_v50 = vpop.xlane.xlu0 %285 }
  0xd5   :  { %425 = vrot.lane.b32.xlu0 %v423_v37, %s861_s1  ;;  %419 = vrot.lane.b32.xlu1 %v417_v48, %s860_s5  ;;  %v429_v22 = vmul.f32 %v249_v14, %v215_v46  ;;  %v287_v56 = vmul.f32 1.5258789e-05, %v286_v50  ;;  %v386_v15 = vmul.f32 %v249_v14, %v212_v43  ;;  %v472_v58 = vmul.f32 %v249_v14, %v219_v47 }
  0xd7   :  { %v288_v30 = vmul.f32 %v287_v56, %v1197_v55 }
  0xd9   :  { %499 = vrot.lane.b32.xlu0 %v497_v31, %s859_s3  ;;  %382 = vrot.lane.b32.xlu1 %v380_v19, %s861_s1  ;;  %v435_v23 = vmul.f32 %v288_v30, %v254_v63  ;;  %v392_v26 = vmul.f32 %v288_v30, %v251_v54  ;;  %v478_v21 = vmul.f32 %v288_v30, %v258_v16 }
  0xda   :  { %v515_v16 = vmul.f32 %v249_v14, %v223_v52 }
  0xdc   :  { %v325_v0 = vpop.xlane.xlu1 %324 }
  0xdd   :  { %431 = vrot.lane.b32.xlu0 %v429_v22, %s862_s27  ;;  %462 = vrot.lane.b32.xlu1 %v460_v57, %s860_s5  ;;  %v326_v46 = vmul.f32 1.5258789e-05, %v325_v0 }
  0xdf   :  { %v327_v43 = vmul.f32 %v326_v46, %v1197_v55 }
  0xe1   :  { %505 = vrot.lane.b32.xlu0 %v503_v2, %s860_s5  ;;  %388 = vrot.lane.b32.xlu1 %v386_v15, %s862_s27  ;;  %v398_v35 = vmul.f32 %v327_v43, %v290_v49  ;;  %v364_v63 = vpop.xlane.xlu0 %363  ;;  %v540_v49 = vmul.f32 %v1200_v1, %v110_v18  ;;  %v441_v10 = vmul.f32 %v327_v43, %v293_v59 }
  0xe2   :  { %v365_v54 = vmul.f32 1.5258789e-05, %v364_v63  ;;  %v521_v59 = vmul.f32 %v288_v30, %v262_v29  ;;  %v484_v52 = vmul.f32 %v327_v43, %v297_v60  ;;  %v564_v29 = vmul.f32 %v288_v30, %v266_v42 }
  0xe3   :  { %v527_v33 = vmul.f32 %v327_v43, %v301_v4 }
  0xe4   :  { %v366_v47 = vmul.f32 %v365_v54, %v1197_v55 }
  0xe5   :  { %437 = vrot.lane.b32.xlu0 %v435_v23, %s863_s8  ;;  %468 = vrot.lane.b32.xlu1 %v466_v17, %s861_s1 }
  0xe6   :  { %v447_v18 = vmul.f32 %v366_v47, %v332_v32  ;;  %v404_v27 = vmul.f32 %v366_v47, %v329_v13  ;;  %v490_v1 = vmul.f32 %v366_v47, %v336_v41  ;;  %v558_v32 = vmul.f32 %v249_v14, %v227_v53  ;;  %v91_v53 = vpop.xlane.xlu1 %90 }
  0xe7   :  { %v552_v13 = vmul.f32 %v1212_v34, %v188_v39  ;;  %v576_v60 = vmul.f32 %v366_v47, %v344_v45  ;;  %v533_v41 = vmul.f32 %v366_v47, %v340_v44  ;;  %v570_v39 = vmul.f32 %v327_v43, %v305_v12 }
  0xe8   :  { %v92_v44 = vmul.f32 1.5258789e-05, %v91_v53 }
  0xe9   :  { %511 = vrot.lane.b32.xlu0 %v509_v20, %s861_s1  ;;  %394 = vrot.lane.b32.xlu1 %v392_v26, %s863_s8 }
  0xea   :  { %v93_v12 = vmul.f32 %v92_v44, %v1197_v55 }
  0xec   :  { %v410_v56 = vmul.f32 %v93_v12, %v58_v62  ;;  %v367_v23 = vmul.f32 %v93_v12, %v55_v61  ;;  %v453_v54 = vmul.f32 %v93_v12, %v62_v24  ;;  %v496_v24 = vmul.f32 %v93_v12, %v66_v25 }
  0xed   :  { %400 = vrot.lane.b32.xlu0 %v398_v35, %s864_s19  ;;  %474 = vrot.lane.b32.xlu1 %v472_v58, %s862_s27 }
  0xf1   :  { %480 = vrot.lane.b32.xlu0 %v478_v21, %s863_s8  ;;  %542 = vrot.lane.b32.xlu1 %v540_v49, %s859_s3 }
  0xf5   :  { %548 = vrot.lane.b32.xlu0 %v546_v28, %s860_s5  ;;  %443 = vrot.lane.b32.xlu1 %v441_v10, %s864_s19 }
  0xf9   :  { %449 = vrot.lane.b32.xlu0 %v447_v18, %s866_s24  ;;  %517 = vrot.lane.b32.xlu1 %v515_v16, %s862_s27 }
  0xfd   :  { %523 = vrot.lane.b32.xlu0 %v521_v59, %s863_s8  ;;  %406 = vrot.lane.b32.xlu1 %v404_v27, %s866_s24 }
 0x101   :  { %492 = vrot.lane.b32.xlu0 %v490_v1, %s866_s24  ;;  %486 = vrot.lane.b32.xlu1 %v484_v52, %s864_s19 }
 0x105   :  { %560 = vrot.lane.b32.xlu0 %v558_v32, %s862_s27  ;;  %554 = vrot.lane.b32.xlu1 %v552_v13, %s861_s1 }
 0x109   :  { %566 = vrot.lane.b32.xlu0 %v564_v29, %s863_s8  ;;  %529 = vrot.lane.b32.xlu1 %v527_v33, %s864_s19 }
 0x10d   :  { %578 = vrot.lane.b32.xlu0 %v576_v60, %s866_s24  ;;  %535 = vrot.lane.b32.xlu1 %v533_v41, %s866_s24 }
 0x111   :  { %572 = vrot.lane.b32.xlu1 %v570_v39, %s864_s19  ;;  %v539_v39 = vmul.f32 %v93_v12, %v70_v51 }
 0x13f   :  { %v371_v34 = vpop.permute.xlu0 %370  ;;  %v414_v42 = vpop.permute.xlu1 %413 }
 0x140   :  { %v416_v15 = vadd.f32 %v414_v42, %v410_v56  ;;  %v373_v26 = vadd.f32 %v371_v34, %v367_v23 }
 0x143   :  { %v457_v11 = vpop.permute.xlu0 %456  ;;  %v377_v4 = vpop.permute.xlu1 %376 }
 0x144   :  { %v379_v35 = vadd.f32 %v377_v4, %v373_v26  ;;  %v459_v21 = vadd.f32 %v457_v11, %v453_v54 }
 0x147   :  { %v426_v36 = vpop.permute.xlu0 %425  ;;  %v420_v37 = vpop.permute.xlu1 %419 }
 0x148   :  { %v422_v46 = vadd.f32 %v420_v37, %v416_v15 }
 0x14a   :  { %v428_v20 = vadd.f32 %v426_v36, %v422_v46 }
 0x14b   :  { %v500_v40 = vpop.permute.xlu0 %499  ;;  %v383_v48 = vpop.permute.xlu1 %382 }
 0x14c   :  { %v385_v62 = vadd.f32 %v383_v48, %v379_v35  ;;  %v502_v41 = vadd.f32 %v500_v40, %v496_v24 }
 0x14f   :  { %v432_v45 = vpop.permute.xlu0 %431  ;;  %v463_v14 = vpop.permute.xlu1 %462 }
 0x150   :  { %v434_v63 = vadd.f32 %v432_v45, %v428_v20  ;;  %v465_v61 = vadd.f32 %v463_v14, %v459_v21 }
 0x153   :  { %v506_v19 = vpop.permute.xlu0 %505  ;;  %v389_v50 = vpop.permute.xlu1 %388 }
 0x154   :  { %v391_v49 = vadd.f32 %v389_v50, %v385_v62  ;;  %v508_v34 = vadd.f32 %v506_v19, %v502_v41 }
 0x157   :  { %v438_v31 = vpop.permute.xlu0 %437  ;;  %v469_v22 = vpop.permute.xlu1 %468 }
 0x158   :  { %v440_v38 = vadd.f32 %v438_v31, %v434_v63  ;;  %v471_v27 = vadd.f32 %v469_v22, %v465_v61 }
 0x15b   :  { %v512_v57 = vpop.permute.xlu0 %511  ;;  %v395_v30 = vpop.permute.xlu1 %394 }
 0x15c   :  { %v397_v18 = vadd.f32 %v395_v30, %v391_v49  ;;  %v514_v36 = vadd.f32 %v512_v57, %v508_v34  ;;  %v867_v57 = vmov 269488144  }
 0x15f   :  { %v401_v0 = vpop.permute.xlu0 %400  ;;  %v475_v2 = vpop.permute.xlu1 %474 }
 0x160   :  { %v403_v59 = vadd.f32 %v401_v0, %v397_v18  ;;  %v477_v32 = vadd.f32 %v475_v2, %v471_v27  ;;  %v587_v0 = vunpack.c.l.s4 %v867_v57 }
 0x162   :  { %v588_v2 = vunpack.c.0.s8 %v587_v0 }
 0x163   :  { %v481_v17 = vpop.permute.xlu0 %480  ;;  %v543_v43 = vpop.permute.xlu1 %542 }
 0x164   :  { %v483_v29 = vadd.f32 %v481_v17, %v477_v32  ;;  %v545_v42 = vadd.f32 %v543_v43, %v539_v39  ;;  %v591_v46 = vsub.s32 %v588_v2, %v918_v5 }
 0x167   :  { %v549_v55 = vpop.permute.xlu0 %548  ;;  %v444_v58 = vpop.permute.xlu1 %443 }
 0x168   :  { %v446_v47 = vadd.f32 %v444_v58, %v440_v38  ;;  %v551_v37 = vadd.f32 %v549_v55, %v545_v42 }
 0x16b   :  { %v450_v28 = vpop.permute.xlu0 %449  ;;  %v518_v10 = vpop.permute.xlu1 %517 }
 0x16c   :  { %v452_v16 = vadd.f32 %v450_v28, %v446_v47  ;;  %v520_v45 = vadd.f32 %v518_v10, %v514_v36 }
 0x16e   :  { %597 = vperm.xlu0 %800, %v452_v16  }
 0x16f   :  { %v524_v1 = vpop.permute.xlu0 %523  ;;  %v407_v52 = vpop.permute.xlu1 %406 }
 0x170   :  { %v409_v13 = vadd.f32 %v407_v52, %v403_v59  ;;  %v526_v25 = vadd.f32 %v524_v1, %v520_v45  ;;  %v674_v52 = vld [vmem:[%s1404_s25] sm:$0xf] }
 0x172   :  { %584 = vperm.xlu1 %799, %v409_v13  }
 0x173   :  { %v493_v33 = vpop.permute.xlu0 %492  ;;  %v487_v60 = vpop.permute.xlu1 %486 }
 0x174   :  { %v489_v53 = vadd.f32 %v487_v60, %v483_v29 }
 0x176   :  { %v495_v11 = vadd.f32 %v493_v33, %v489_v53 }
 0x177   :  { %v555_v4 = vpop.permute.xlu1 %554  ;;  %v561_v48 = vpop.permute.xlu0 %560 }
 0x178   :  { %611 = vperm.xlu1 %799, %v495_v11   ;;  %v557_v14 = vadd.f32 %v555_v4, %v551_v37 }
 0x17a   :  { %v563_v50 = vadd.f32 %v561_v48, %v557_v14 }
 0x17b   :  { %v530_v44 = vpop.permute.xlu1 %529  ;;  %v567_v22 = vpop.permute.xlu0 %566 }
 0x17c   :  { %v532_v31 = vadd.f32 %v530_v44, %v526_v25  ;;  %v569_v30 = vadd.f32 %v567_v22, %v563_v50 }
 0x17f   :  { %v536_v56 = vpop.permute.xlu1 %535  ;;  %v579_v12 = vpop.permute.xlu0 %578 }
 0x180   :  { %v538_v40 = vadd.f32 %v536_v56, %v532_v31 }
 0x182   :  { %625 = vperm.xlu1 %799, %v538_v40  }
 0x183   :  { %v573_v51 = vpop.permute.xlu1 %572 }
 0x184   :  { %v575_v19 = vadd.f32 %v573_v51, %v569_v30 }
 0x186   :  { %v581_v15 = vadd.f32 %v579_v12, %v575_v19 }
 0x188   :  { %639 = vperm.xlu0 %800, %v581_v15  }
 0x1ed   :  { %v598_v17 = vpop.permute.xlu0 %597 }
 0x1ee   :  { %v605_v20 = vrot.slane %v598_v17, %v591_v46 }
 0x1f0   :  { %v607_v58 = vmul.f32 %v927_v6, %v605_v20 }
 0x1f1   :  { %v585_v23 = vpop.permute.xlu1 %584 }
 0x1f2   :  { %v592_v26 = vrot.slane %v585_v23, %v591_v46 }
 0x1f4   :  { %v594_v63 = vmul.f32 %v592_v26, %v916_v3 }
 0x1f6   :  { %v608_v38 = vadd.f32 %v607_v58, %v594_v63 }
 0x1f7   :  { %v612_v43 = vpop.permute.xlu1 %611 }
 0x1f8   :  { %v619_v35 = vrot.slane %v612_v43, %v591_v46 }
 0x1fa   :  { %v621_v54 = vmul.f32 %v936_v7, %v619_v35 }
 0x1fc   :  { %v622_v49 = vadd.f32 %v621_v54, %v608_v38 }
 0x201   :  { %v626_v55 = vpop.permute.xlu1 %625 }
 0x202   :  { %v633_v62 = vrot.slane %v626_v55, %v591_v46 }
 0x204   :  { %v635_v21 = vmul.f32 %v945_v8, %v633_v62 }
 0x206   :  { %v636_v28 = vadd.f32 %v635_v21, %v622_v49 }
 0x207   :  { %v640_v47 = vpop.permute.xlu0 %639 }
 0x208   :  { %v647_v5 = vrot.slane %v640_v47, %v591_v46 }
 0x20a   :  { %v649_v10 = vadd.f32 %v647_v5, %v636_v28 }
 0x20c   :  { %v657_v61 = vrot.slane %v649_v10, %v952_v9 }
 0x20e   :  { %v658_v18 = vcombine.high %v657_v61, %v657_v61  ;;  %v666_v16 = vsel %vm86_vm0, %v657_v61, -inf  ;;  %v661_v6 = vsel %vm86_vm0, %v657_v61, inf }
 0x210   :  { %v667_v3 = vsel %vm86_vm0, %v658_v18, -inf  ;;  %v662_v7 = vsel %vm86_vm0, %v658_v18, inf }
 0x211   :  { %v668_v27 = vmax.f32 %v666_v16, %v667_v3  ;;  %v663_v59 = vmin.f32 %v661_v6, %v662_v7 }
 0x213   :  { %669 = vmax.xlane.f32.xlu0 %v668_v27  ;;  %664 = vmin.xlane.f32.xlu1 %v663_v59 }
 0x2a0   :  { %v665_v8 = vpop.xlane.xlu1 %664  ;;  %v670_v53 = vpop.xlane.xlu0 %669 }
 0x2a1   :  { %v682_v1 = vrot.slane %v665_v8, %v591_v46  ;;  %v671_v34 = vsub.f32 %v670_v53, %v665_v8 }
 0x2a3   :  { %v684_v32 = vsub.f32 %v649_v10, %v682_v1  ;;  %v672_v42 = vadd.f32 1e-06, %v671_v34 }
 0x2a5   :  { %v685_v13 = vmul.f32 %v684_v32, %v674_v52  ;;  %801 = vrcp.f32 %v672_v42 }
 0x2a7   :  { %v686_v24 = vmul.f32 %v685_v13, %v685_v13 }
 0x2a9   :  { %v694_v29 = vrot.slane %v686_v24, %v952_v9 }
 0x2ab   :  { %v695_v33 = vcombine.high %v694_v29, %v694_v29  ;;  %v698_v60 = vsel %vm86_vm0, %v694_v29, 0.0 }
 0x2ad   :  { %v699_v41 = vsel %vm86_vm0, %v695_v33, 0.0 }
 0x2ae   :  { %v700_v39 = vadd.f32 %v699_v41, %v698_v60 }
 0x2af   :  { %v802_v11 = vpop.eup %801 }
 0x2b0   :  { %701 = vadd.xlane.f32.xlu0 %v700_v39  ;;  %v703_v4 = vmul.f32 %v802_v11, %v802_v11 }
 0x33d   :  { %v702_v36 = vpop.xlane.xlu0 %701 }
 0x33e   :  { %v704_v37 = vmul.f32 %v703_v4, %v702_v36 }
 0x340   :  { %v706_v48 = vsel %vm705_vm9, %v704_v37, 0.0 }
 0x341   :  { %707 = vadd.xlane.f32.xlu0 %v706_v48 }
 0x3ce   :  { %v708_v45 = vpop.xlane.xlu0 %707 }
 0x3cf   :  { %v709_v9 = vrot.slane %v708_v45, 4 }
 0x3d1   :  { %v710_v14 = vadd.f32 %v709_v9, %v708_v45 }
 0x3d3   :  { %v711_v44 = vrot.slane %v710_v14, 2 }
 0x3d5   :  { %v712_v25 = vadd.f32 %v711_v44, %v710_v14 }
 0x3d7   :  { %v713_v50 = vrot.slane %v712_v25, 1 }
 0x3d9   :  { %v714_v31 = vadd.f32 %v713_v50, %v712_v25 }
 0x3db   :  { %783 = vpush %v714_v31 }
 0x40c   :  { %s784_s6 = spop %783 }
 0x40d   :  { %v716_v22 = vstv %s784_s6 }
 0x40e   :  { %717 = vst [vmem:[#allocation7] sm:$0xff] %v716_v22 }
 0x40f   :  { %838 = shalt.err (!%p835_p0)
}
 0x410   :  { %s1405_s14 = sld [smem:[#allocation24_spill]] }
 0x416   :  { %s839_s17 = scalar_lea.hbm %s1405_s14, 128 }
 0x417   :  { %p840_p1 = scmp.ne.s32.totalorder %s1405_s14, %s839_s17  ;;  %p843_p2 = scmp.lt.u32.totalorder %s839_s17, %s1405_s14 }
 0x419   :  { %p845_p3 = pnand %p843_p2, %p840_p1 }
 0x41b   :  { %848 = shalt.err (!%p845_p3)
}
 0x41c   :  { %727 = dma.vmem_to_hbm [thread:$0]  %s725_s0, 128, %s1405_s14, [#allocation3]  }
 0x41d   :  { %853 = dma.done.wait [#allocation3], 128  }
 0x41e   :  { %854 = vsyncadd [#allocation3], 4294967168 }
 0x41f   :  { %731 = vsyncpa [#allocation3], 1 }
 0x420   :  { %732 = vsyncpa [#allocation4], 1 }
 0x421   :  { %733 = vsyncpa [#allocation6], 1 }

</bundles_post_ra>
